<compile_context>
chip_gen: v7x
topology: tpu7x:2x2x1
jax: 0.10.0
libtpu: 0.0.40
codegen_flags: <defaults>
</compile_context>

<pallas_src>
import functools

import jax
import jax.numpy as jnp
from jax.experimental import pallas as pl
from jax.experimental.pallas import tpu as pltpu


def _head1_kernel(x_ref, w1_ref, b1_ref, w2_ref, b2_ref, w3_ref, b3_ref, o_ref, *, L):
    """One lane-block of the fused head.

    x_ref:  (C, Nb) bf16, Nb = Bb*L (Bb whole batch rows packed along lanes).
    w*_ref: (Cout, 3*Cin) bf16, columns [k*Cin:(k+1)*Cin] = tap k (k=0 -> l-1).
    b*_ref: (Cout, 1) f32.
    o_ref:  (C, Nb) output.
    """
    N = x_ref.shape[-1]
    lane = jax.lax.broadcasted_iota(jnp.int32, (1, N), 1)
    pos = lane % L                      # position within each packed batch row
    not_first = pos != 0                # zero the l-1 tap at l == 0
    not_last = pos != (L - 1)           # zero the l+1 tap at l == L-1

    def taps(h):
        """h: (Cin, N) f32 -> (3*Cin, N) bf16 stacked [h(l-1); h(l); h(l+1)]."""
        hp = jnp.where(not_first, pltpu.roll(h, shift=1, axis=1), 0.0)
        hn = jnp.where(not_last, pltpu.roll(h, shift=N - 1, axis=1), 0.0)
        return jnp.concatenate(
            [hp.astype(jnp.bfloat16), h.astype(jnp.bfloat16), hn.astype(jnp.bfloat16)],
            axis=0,
        )

    def conv_relu(h, w_ref, b_ref):
        y = jnp.dot(w_ref[...], taps(h), preferred_element_type=jnp.float32)
        return jnp.maximum(y + b_ref[...], 0.0)

    h = x_ref[...].astype(jnp.float32)          # (C, N)
    h = conv_relu(h, w1_ref, b1_ref)            # (256, N)
    h = conv_relu(h, w2_ref, b2_ref)            # (128, N)
    # Dropout(0.2): identity at inference.
    h = conv_relu(h, w3_ref, b3_ref)            # (C, N)
    o_ref[...] = h.astype(o_ref.dtype)


def _choose_bb(B, L, target_lanes=2048):
    """Batch rows per lane block: largest divisor of B with Bb*L <= target_lanes."""
    if L % 128 != 0:
        return B  # whole-extent lane block keeps the BlockSpec legal for odd L
    best = 1
    for cand in range(1, B + 1):
        if B % cand == 0 and cand * L <= target_lanes:
            best = cand
    return best


@jax.jit
def head1_forward(x, w1, b1, w2, b2, w3, b3):
    """x: (B, C, L) float32 (PyTorch NCL layout).
    w_i: PyTorch Conv1d weights (Cout, Cin, 3).  b_i: (Cout,)."""
    B, C, L = x.shape
    c1 = w1.shape[0]   # 256
    c2 = w2.shape[0]   # 128

    # Pack batch rows along lanes: (B, C, L) -> (C, B*L), lane index = b*L + l.
    x_packed = jnp.transpose(x, (1, 0, 2)).reshape(C, B * L).astype(jnp.bfloat16)

    # Fold the 3 taps into the K dim: (Cout, Cin, 3) -> (Cout, 3, Cin) -> (Cout, 3*Cin).
    def fold(w):
        co, ci, _ = w.shape
        return jnp.transpose(w, (0, 2, 1)).reshape(co, 3 * ci).astype(jnp.bfloat16)

    w1c, w2c, w3c = fold(w1), fold(w2), fold(w3)
    b1c = b1.reshape(-1, 1).astype(jnp.float32)
    b2c = b2.reshape(-1, 1).astype(jnp.float32)
    b3c = b3.reshape(-1, 1).astype(jnp.float32)

    Bb = _choose_bb(B, L)
    Nb = Bb * L
    grid = (B // Bb,)

    full = lambda a: pl.BlockSpec(a.shape, lambda i: (0, 0))

    flops = 2 * B * L * (c1 * 3 * C + c2 * 3 * c1 + C * 3 * c2)
    bytes_accessed = (
        B * C * L * 2                                  # x_packed (bf16) in
        + (w1c.size + w2c.size + w3c.size) * 2         # weights (bf16)
        + (b1c.size + b2c.size + b3c.size) * 4         # biases (f32)
        + B * C * L * x.dtype.itemsize                 # output
    )

    out_packed = pl.pallas_call(
        functools.partial(_head1_kernel, L=L),
        out_shape=jax.ShapeDtypeStruct((C, B * L), x.dtype),
        grid_spec=pltpu.PrefetchScalarGridSpec(
            num_scalar_prefetch=0,
            grid=grid,
            in_specs=[
                pl.BlockSpec((C, Nb), lambda i: (0, i)),   # x, Bb rows per step
                full(w1c), full(b1c),
                full(w2c), full(b2c),
                full(w3c), full(b3c),
            ],
            out_specs=pl.BlockSpec((C, Nb), lambda i: (0, i)),
        ),
        compiler_params=pltpu.CompilerParams(
            dimension_semantics=("parallel",),
            vmem_limit_bytes=32 * 1024 * 1024,
        ),
        cost_estimate=pl.CostEstimate(
            flops=int(flops), transcendentals=0, bytes_accessed=int(bytes_accessed)
        ),
    )(x_packed, w1c, b1c, w2c, b2c, w3c, b3c)

    # Un-pack lanes back to (B, C, L).
    return jnp.transpose(out_packed.reshape(C, B, L), (1, 0, 2))


def _reference_forward(x, w1, b1, w2, b2, w3, b3):
    """Pure-JAX reference with the same numerics (bf16 operands, f32 accumulation)."""
    def conv1d_relu(h, w, b):
        Lh = h.shape[-1]
        hpad = jnp.pad(h.astype(jnp.bfloat16), ((0, 0), (0, 0), (1, 1)))
        wb = w.astype(jnp.bfloat16)
        y = b[None, :, None].astype(jnp.float32)
        for k in range(3):
            y = y + jnp.einsum("oi,bil->bol", wb[:, :, k], hpad[:, :, k:k + Lh],
                               preferred_element_type=jnp.float32)
        return jnp.maximum(y, 0.0)

    h = conv1d_relu(x, w1, b1)
    h = conv1d_relu(h, w2, b2)
    h = conv1d_relu(h, w3, b3)
    return h


if __name__ == "__main__":
    B, C, L = 2, 4, 128   # channels = 4 (Head1 `channels`), lane-friendly length

    key = jax.random.PRNGKey(0)
    kx, k1, k2, k3, k4, k5, k6 = jax.random.split(key, 7)

    x = jax.random.normal(kx, (B, C, L), jnp.float32)
    w1 = jax.random.normal(k1, (256, C, 3), jnp.float32) * 0.1
    b1 = jax.random.normal(k4, (256,), jnp.float32) * 0.1
    w2 = jax.random.normal(k2, (128, 256, 3), jnp.float32) * 0.1
    b2 = jax.random.normal(k5, (128,), jnp.float32) * 0.1
    w3 = jax.random.normal(k3, (C, 128, 3), jnp.float32) * 0.1
    b3 = jax.random.normal(k6, (C,), jnp.float32) * 0.1

    out = head1_forward(x, w1, b1, w2, b2, w3, b3)
    out = jax.block_until_ready(out)

    ref = _reference_forward(x, w1, b1, w2, b2, w3, b3)
    assert out.shape == (B, C, L), out.shape
    max_diff = float(jnp.max(jnp.abs(out - ref)))
    assert jnp.allclose(out, ref, atol=1e-2, rtol=1e-2), f"mismatch vs reference: {max_diff}"

    print("KERNEL_OK")
</pallas_src>

<mosaic_0001>
module attributes {stable_mosaic.version = 11 : i64} {
  func.func @_head1_kernel(%arg0: i32, %arg1: memref<4x256xbf16, #tpu.memory_space<vmem>>, %arg2: memref<256x12xbf16, #tpu.memory_space<vmem>>, %arg3: memref<256x1xf32, #tpu.memory_space<vmem>>, %arg4: memref<128x768xbf16, #tpu.memory_space<vmem>>, %arg5: memref<128x1xf32, #tpu.memory_space<vmem>>, %arg6: memref<4x384xbf16, #tpu.memory_space<vmem>>, %arg7: memref<4x1xf32, #tpu.memory_space<vmem>>, %arg8: memref<4x256xf32, #tpu.memory_space<vmem>>) attributes {dimension_semantics = [#tpu.dimension_semantics<parallel>], iteration_bounds = array<i64: 1>, scalar_prefetch = 0 : i64, scratch_operands = 0 : i64, tpu.core_type = #tpu.core_type<tc>, window_params = [{transform_indices = @transform_0, window_bounds = array<i64: 4, 256>}, {pipeline_mode = #tpu.pipeline_mode<synchronous>, transform_indices = @transform_1, window_bounds = array<i64: 256, 12>}, {pipeline_mode = #tpu.pipeline_mode<synchronous>, transform_indices = @transform_2, window_bounds = array<i64: 256, 1>}, {pipeline_mode = #tpu.pipeline_mode<synchronous>, transform_indices = @transform_3, window_bounds = array<i64: 128, 768>}, {pipeline_mode = #tpu.pipeline_mode<synchronous>, transform_indices = @transform_4, window_bounds = array<i64: 128, 1>}, {pipeline_mode = #tpu.pipeline_mode<synchronous>, transform_indices = @transform_5, window_bounds = array<i64: 4, 384>}, {pipeline_mode = #tpu.pipeline_mode<synchronous>, transform_indices = @transform_6, window_bounds = array<i64: 4, 1>}, {transform_indices = @transform_7, window_bounds = array<i64: 4, 256>}]} {
    %0 = tpu.iota {dimensions = array<i32: 1>} : vector<1x256xi32>
    %c128_i32 = arith.constant 128 : i32
    %c0_i32 = arith.constant 0 : i32
    %1 = arith.cmpi eq, %c128_i32, %c0_i32 : i32
    %c1_i32 = arith.constant 1 : i32
    %2 = arith.select %1, %c1_i32, %c128_i32 : i32
    %3 = vector.broadcast %2 : i32 to vector<1x256xi32>
    %4 = arith.remsi %0, %3 : vector<1x256xi32>
    %c0_i32_0 = arith.constant 0 : i32
    %5 = vector.broadcast %c0_i32_0 : i32 to vector<1x256xi32>
    %6 = arith.cmpi ne, %4, %5 : vector<1x256xi32>
    %c0_i32_1 = arith.constant 0 : i32
    %7 = vector.broadcast %c0_i32_1 : i32 to vector<1x256xi32>
    %8 = arith.cmpi slt, %4, %7 : vector<1x256xi32>
    %c0_i32_2 = arith.constant 0 : i32
    %9 = arith.cmpi slt, %2, %c0_i32_2 : i32
    %10 = vector.broadcast %9 : i1 to vector<1x256xi1>
    %11 = vector.broadcast %10 : vector<1x256xi1> to vector<1x256xi1>
    %12 = arith.xori %8, %11 : vector<1x256xi1>
    %13 = arith.andi %12, %6 : vector<1x256xi1>
    %14 = vector.broadcast %2 : i32 to vector<1x256xi32>
    %15 = arith.addi %4, %14 : vector<1x256xi32>
    %16 = arith.select %13, %15, %4 : vector<1x256xi1>, vector<1x256xi32>
    %c0_i32_3 = arith.constant 0 : i32
    %17 = vector.broadcast %c0_i32_3 : i32 to vector<1x256xi32>
    %18 = arith.cmpi ne, %16, %17 : vector<1x256xi32>
    %c127_i32 = arith.constant 127 : i32
    %19 = vector.broadcast %c127_i32 : i32 to vector<1x256xi32>
    %20 = arith.cmpi ne, %16, %19 : vector<1x256xi32>
    %c0 = arith.constant 0 : index
    %c0_4 = arith.constant 0 : index
    %21 = vector.load %arg1[%c0, %c0_4] : memref<4x256xbf16, #tpu.memory_space<vmem>>, vector<4x256xbf16>
    %22 = arith.extf %21 : vector<4x256xbf16> to vector<4x256xf32>
    %c0_5 = arith.constant 0 : index
    %c0_6 = arith.constant 0 : index
    %23 = vector.load %arg2[%c0_5, %c0_6] : memref<256x12xbf16, #tpu.memory_space<vmem>>, vector<256x12xbf16>
    %c1_i32_7 = arith.constant 1 : i32
    %24 = tpu.dynamic_rotate %22 by %c1_i32_7 dim 1 : vector<4x256xf32>, i32 -> vector<4x256xf32>
    %cst = arith.constant 0.000000e+00 : f32
    %25 = vector.shape_cast %18 : vector<1x256xi1> to vector<1x256xi1>
    %26 = vector.broadcast %25 : vector<1x256xi1> to vector<4x256xi1>
    %27 = vector.broadcast %cst : f32 to vector<4x256xf32>
    %28 = arith.select %26, %24, %27 : vector<4x256xi1>, vector<4x256xf32>
    %c255_i32 = arith.constant 255 : i32
    %29 = tpu.dynamic_rotate %22 by %c255_i32 dim 1 : vector<4x256xf32>, i32 -> vector<4x256xf32>
    %cst_8 = arith.constant 0.000000e+00 : f32
    %30 = vector.shape_cast %20 : vector<1x256xi1> to vector<1x256xi1>
    %31 = vector.broadcast %30 : vector<1x256xi1> to vector<4x256xi1>
    %32 = vector.broadcast %cst_8 : f32 to vector<4x256xf32>
    %33 = arith.select %31, %29, %32 : vector<4x256xi1>, vector<4x256xf32>
    %34 = arith.truncf %28 : vector<4x256xf32> to vector<4x256xbf16>
    %35 = arith.truncf %22 : vector<4x256xf32> to vector<4x256xbf16>
    %36 = arith.truncf %33 : vector<4x256xf32> to vector<4x256xbf16>
    %37 = tpu.concatenate %34, %35, %36 in 0 : vector<4x256xbf16>, vector<4x256xbf16>, vector<4x256xbf16> -> vector<12x256xbf16>
    %cst_9 = arith.constant dense<0.000000e+00> : vector<256x256xf32>
    %38 = tpu.matmul %23, %37, %cst_9 {dimension_numbers = #tpu.dot_dimension_numbers<[1], [0], [0], [1], [0, 0, 1, 1], [], []>} : vector<256x12xbf16>, vector<12x256xbf16>, vector<256x256xf32> -> vector<256x256xf32>
    %c0_10 = arith.constant 0 : index
    %c0_11 = arith.constant 0 : index
    %39 = vector.load %arg3[%c0_10, %c0_11] : memref<256x1xf32, #tpu.memory_space<vmem>>, vector<256x1xf32>
    %40 = vector.broadcast %39 : vector<256x1xf32> to vector<256x256xf32>
    %41 = arith.addf %38, %40 : vector<256x256xf32>
    %cst_12 = arith.constant 0.000000e+00 : f32
    %42 = vector.broadcast %cst_12 : f32 to vector<256x256xf32>
    %43 = arith.maximumf %41, %42 : vector<256x256xf32>
    %c0_13 = arith.constant 0 : index
    %c0_14 = arith.constant 0 : index
    %44 = vector.load %arg4[%c0_13, %c0_14] : memref<128x768xbf16, #tpu.memory_space<vmem>>, vector<128x768xbf16>
    %c1_i32_15 = arith.constant 1 : i32
    %45 = tpu.dynamic_rotate %43 by %c1_i32_15 dim 1 : vector<256x256xf32>, i32 -> vector<256x256xf32>
    %cst_16 = arith.constant 0.000000e+00 : f32
    %46 = vector.shape_cast %18 : vector<1x256xi1> to vector<1x256xi1>
    %47 = vector.broadcast %46 : vector<1x256xi1> to vector<256x256xi1>
    %48 = vector.broadcast %cst_16 : f32 to vector<256x256xf32>
    %49 = arith.select %47, %45, %48 : vector<256x256xi1>, vector<256x256xf32>
    %c255_i32_17 = arith.constant 255 : i32
    %50 = tpu.dynamic_rotate %43 by %c255_i32_17 dim 1 : vector<256x256xf32>, i32 -> vector<256x256xf32>
    %cst_18 = arith.constant 0.000000e+00 : f32
    %51 = vector.shape_cast %20 : vector<1x256xi1> to vector<1x256xi1>
    %52 = vector.broadcast %51 : vector<1x256xi1> to vector<256x256xi1>
    %53 = vector.broadcast %cst_18 : f32 to vector<256x256xf32>
    %54 = arith.select %52, %50, %53 : vector<256x256xi1>, vector<256x256xf32>
    %55 = arith.truncf %49 : vector<256x256xf32> to vector<256x256xbf16>
    %56 = arith.truncf %43 : vector<256x256xf32> to vector<256x256xbf16>
    %57 = arith.truncf %54 : vector<256x256xf32> to vector<256x256xbf16>
    %58 = tpu.concatenate %55, %56, %57 in 0 : vector<256x256xbf16>, vector<256x256xbf16>, vector<256x256xbf16> -> vector<768x256xbf16>
    %cst_19 = arith.constant dense<0.000000e+00> : vector<128x256xf32>
    %59 = tpu.matmul %44, %58, %cst_19 {dimension_numbers = #tpu.dot_dimension_numbers<[1], [0], [0], [1], [0, 0, 1, 1], [], []>} : vector<128x768xbf16>, vector<768x256xbf16>, vector<128x256xf32> -> vector<128x256xf32>
    %c0_20 = arith.constant 0 : index
    %c0_21 = arith.constant 0 : index
    %60 = vector.load %arg5[%c0_20, %c0_21] : memref<128x1xf32, #tpu.memory_space<vmem>>, vector<128x1xf32>
    %61 = vector.broadcast %60 : vector<128x1xf32> to vector<128x256xf32>
    %62 = arith.addf %59, %61 : vector<128x256xf32>
    %cst_22 = arith.constant 0.000000e+00 : f32
    %63 = vector.broadcast %cst_22 : f32 to vector<128x256xf32>
    %64 = arith.maximumf %62, %63 : vector<128x256xf32>
    %c0_23 = arith.constant 0 : index
    %c0_24 = arith.constant 0 : index
    %65 = vector.load %arg6[%c0_23, %c0_24] : memref<4x384xbf16, #tpu.memory_space<vmem>>, vector<4x384xbf16>
    %c1_i32_25 = arith.constant 1 : i32
    %66 = tpu.dynamic_rotate %64 by %c1_i32_25 dim 1 : vector<128x256xf32>, i32 -> vector<128x256xf32>
    %cst_26 = arith.constant 0.000000e+00 : f32
    %67 = vector.shape_cast %18 : vector<1x256xi1> to vector<1x256xi1>
    %68 = vector.broadcast %67 : vector<1x256xi1> to vector<128x256xi1>
    %69 = vector.broadcast %cst_26 : f32 to vector<128x256xf32>
    %70 = arith.select %68, %66, %69 : vector<128x256xi1>, vector<128x256xf32>
    %c255_i32_27 = arith.constant 255 : i32
    %71 = tpu.dynamic_rotate %64 by %c255_i32_27 dim 1 : vector<128x256xf32>, i32 -> vector<128x256xf32>
    %cst_28 = arith.constant 0.000000e+00 : f32
    %72 = vector.shape_cast %20 : vector<1x256xi1> to vector<1x256xi1>
    %73 = vector.broadcast %72 : vector<1x256xi1> to vector<128x256xi1>
    %74 = vector.broadcast %cst_28 : f32 to vector<128x256xf32>
    %75 = arith.select %73, %71, %74 : vector<128x256xi1>, vector<128x256xf32>
    %76 = arith.truncf %70 : vector<128x256xf32> to vector<128x256xbf16>
    %77 = arith.truncf %64 : vector<128x256xf32> to vector<128x256xbf16>
    %78 = arith.truncf %75 : vector<128x256xf32> to vector<128x256xbf16>
    %79 = tpu.concatenate %76, %77, %78 in 0 : vector<128x256xbf16>, vector<128x256xbf16>, vector<128x256xbf16> -> vector<384x256xbf16>
    %cst_29 = arith.constant dense<0.000000e+00> : vector<4x256xf32>
    %80 = tpu.matmul %65, %79, %cst_29 {dimension_numbers = #tpu.dot_dimension_numbers<[1], [0], [0], [1], [0, 0, 1, 1], [], []>} : vector<4x384xbf16>, vector<384x256xbf16>, vector<4x256xf32> -> vector<4x256xf32>
    %c0_30 = arith.constant 0 : index
    %c0_31 = arith.constant 0 : index
    %81 = vector.load %arg7[%c0_30, %c0_31] : memref<4x1xf32, #tpu.memory_space<vmem>>, vector<4x1xf32>
    %82 = vector.broadcast %81 : vector<4x1xf32> to vector<4x256xf32>
    %83 = arith.addf %80, %82 : vector<4x256xf32>
    %cst_32 = arith.constant 0.000000e+00 : f32
    %84 = vector.broadcast %cst_32 : f32 to vector<4x256xf32>
    %85 = arith.maximumf %83, %84 : vector<4x256xf32>
    %c0_33 = arith.constant 0 : index
    %c0_34 = arith.constant 0 : index
    %86 = vector.load %arg8[%c0_33, %c0_34] : memref<4x256xf32, #tpu.memory_space<vmem>>, vector<4x256xf32>
    tpu.vector_store %arg8[%c0_33, %c0_34], %85 {strides = array<i32>} : memref<4x256xf32, #tpu.memory_space<vmem>>, vector<4x256xf32>,
    return
  }
  func.func @transform_0(%arg0: i32) -> (i32, i32) {
    %c0_i32 = arith.constant 0 : i32
    %c0_i32_0 = arith.constant 0 : i32
    return %c0_i32, %arg0 : i32, i32
  }
  func.func @transform_1(%arg0: i32) -> (i32, i32) {
    %c0_i32 = arith.constant 0 : i32
    %c0_i32_0 = arith.constant 0 : i32
    %c0_i32_1 = arith.constant 0 : i32
    return %c0_i32, %c0_i32_0 : i32, i32
  }
  func.func @transform_2(%arg0: i32) -> (i32, i32) {
    %c0_i32 = arith.constant 0 : i32
    %c0_i32_0 = arith.constant 0 : i32
    %c0_i32_1 = arith.constant 0 : i32
    return %c0_i32, %c0_i32_0 : i32, i32
  }
  func.func @transform_3(%arg0: i32) -> (i32, i32) {
    %c0_i32 = arith.constant 0 : i32
    %c0_i32_0 = arith.constant 0 : i32
    %c0_i32_1 = arith.constant 0 : i32
    return %c0_i32, %c0_i32_0 : i32, i32
  }
  func.func @transform_4(%arg0: i32) -> (i32, i32) {
    %c0_i32 = arith.constant 0 : i32
    %c0_i32_0 = arith.constant 0 : i32
    %c0_i32_1 = arith.constant 0 : i32
    return %c0_i32, %c0_i32_0 : i32, i32
  }
  func.func @transform_5(%arg0: i32) -> (i32, i32) {
    %c0_i32 = arith.constant 0 : i32
    %c0_i32_0 = arith.constant 0 : i32
    %c0_i32_1 = arith.constant 0 : i32
    return %c0_i32, %c0_i32_0 : i32, i32
  }
  func.func @transform_6(%arg0: i32) -> (i32, i32) {
    %c0_i32 = arith.constant 0 : i32
    %c0_i32_0 = arith.constant 0 : i32
    %c0_i32_1 = arith.constant 0 : i32
    return %c0_i32, %c0_i32_0 : i32, i32
  }
  func.func @transform_7(%arg0: i32) -> (i32, i32) {
    %c0_i32 = arith.constant 0 : i32
    %c0_i32_0 = arith.constant 0 : i32
    return %c0_i32, %arg0 : i32, i32
  }
}

</mosaic_0001>

<bundles_post_ra>
// kernel: head1_forward.1
= control target key start
LH: loop header
LB: loop body
LE: loop exit
PB: predicated region body
PF: predicated region fallthrough
CT: control target
= control target key end

     0   :  { %v3616_v3 = vmov 0   ;;  %s3618_s9 = smov 1   ;;  %s5269_s0 = inlined_call_operand.vmem [shape: bf16[4,256], index: 0, kind: input, shape index: {}]   ;;  %s5270_s1 = inlined_call_operand.vmem [shape: bf16[256,12], index: 1, kind: input, shape index: {}]   ;;  %s5271_s2 = inlined_call_operand.vmem [shape: f32[256,1], index: 2, kind: input, shape index: {}]   ;;  %s5272_s3 = inlined_call_operand.vmem [shape: bf16[128,768], index: 3, kind: input, shape index: {}]   ;;  %s5273_s4 = inlined_call_operand.vmem [shape: f32[128,1], index: 4, kind: input, shape index: {}]   ;;  %s5274_s5 = inlined_call_operand.vmem [shape: bf16[4,384], index: 5, kind: input, shape index: {}]   ;;  %s5275_s6 = inlined_call_operand.vmem [shape: f32[4,1], index: 6, kind: input, shape index: {}]   ;;  %s5276_s7 = inlined_call_operand.hbm [shape: f32[4,256], index: 7, kind: output, shape index: {}]  }
   0x1   :  { %v3664_v0 = vld [vmem:[%s5269_s0] sm:$0xf]  ;;  %3020 = vset.pattern.permute.xlu1 %v3616_v3  ;;  %510 = vmatprep.mubr.bf16.mxu0 %v3616_v3  ;;  %s3617_s0 = smov 127   ;;  %v153_v6 = vld [vmem:[%s5271_s2 + $0x8] sm:$0xff]  ;;  %v155_v7 = vld [vmem:[%s5271_s2 + $0x18] sm:$0xff] }
   0x2   :  { %v152_v1 = vld [vmem:[%s5271_s2] sm:$0xff]  ;;  %v60_v2 = vunpack.c.l.bf16 %v3664_v0  ;;  %590 = vmatprep.mubr.bf16.mxu1 %v3616_v3  ;;  %3021 = vset.pattern.permute.xlu0 %v3616_v3  ;;  %v158_v9 = vld [vmem:[%s5271_s2 + $0x30] sm:$0xff]  ;;  %v157_v12 = vld [vmem:[%s5271_s2 + $0x28] sm:$0xff] }
   0x3   :  { %186 = vperm.xlu1 %3020, %v152_v1   ;;  %v156_v8 = vld [vmem:[%s5271_s2 + $0x20] sm:$0xff]  ;;  %v154_v10 = vld [vmem:[%s5271_s2 + $0x10] sm:$0xff]  ;;  %v159_v14 = vld [vmem:[%s5271_s2 + $0x38] sm:$0xff] }
   0x4   :  { %v94_v4 = vcombine.high %v60_v2, %v60_v2  ;;  %v160_v11 = vld [vmem:[%s5271_s2 + $0x40] sm:$0xff]  ;;  %v162_v13 = vld [vmem:[%s5271_s2 + $0x50] sm:$0xff]  ;;  %v161_v16 = vld [vmem:[%s5271_s2 + $0x48] sm:$0xff] }
   0x5   :  { %v164_v15 = vld [vmem:[%s5271_s2 + $0x60] sm:$0xff]  ;;  %v166_v17 = vld [vmem:[%s5271_s2 + $0x70] sm:$0xff]  ;;  %v163_v18 = vld [vmem:[%s5271_s2 + $0x58] sm:$0xff] }
   0x6   :  { %v3010_v5 = vpack.i.bf16 %v94_v4, %v60_v2  ;;  %v168_v19 = vld [vmem:[%s5271_s2 + $0x80] sm:$0xff]  ;;  %v165_v20 = vld [vmem:[%s5271_s2 + $0x68] sm:$0xff] }
   0x7   :  { %191 = vperm.xlu1 %3020, %v153_v6  }
   0x8   :  { %3011 = vrot.lane.b32.xlu0 %v3010_v5, %s3617_s0 }
   0xb   :  { %201 = vperm.xlu1 %3020, %v155_v7  }
   0xc   :  { %3016 = vrot.lane.b32.xlu0 %v3010_v5, %s3618_s9 }
   0xf   :  { %206 = vperm.xlu1 %3020, %v156_v8  }
  0x10   :  { %196 = vperm.xlu0 %3021, %v154_v10  }
  0x13   :  { %216 = vperm.xlu1 %3020, %v158_v9  }
  0x14   :  { %211 = vperm.xlu0 %3021, %v157_v12  }
  0x17   :  { %226 = vperm.xlu1 %3020, %v160_v11  }
  0x18   :  { %221 = vperm.xlu0 %3021, %v159_v14  }
  0x1b   :  { %236 = vperm.xlu1 %3020, %v162_v13  }
  0x1c   :  { %231 = vperm.xlu0 %3021, %v161_v16  }
  0x1f   :  { %246 = vperm.xlu1 %3020, %v164_v15  }
  0x20   :  { %241 = vperm.xlu0 %3021, %v163_v18  }
  0x23   :  { %256 = vperm.xlu1 %3020, %v166_v17  }
  0x24   :  { %12 = vsyncpa [#allocation3], 0  ;;  %251 = vperm.xlu0 %3021, %v165_v20   ;;  %v170_v21 = vld [vmem:[%s5271_s2 + $0x90] sm:$0xff]  ;;  %v167_v22 = vld [vmem:[%s5271_s2 + $0x78] sm:$0xff]  ;;  %v28_v37 = vlaneseq  ;;  %v3619_v39 = vmov 1983009808   ;;  %v127_v45 = vcombine.low %v3664_v0, %v3664_v0 }
  0x25   :  { %v169_v23 = vld [vmem:[%s5271_s2 + $0x88] sm:$0xff]  ;;  %v172_v24 = vld [vmem:[%s5271_s2 + $0xa0] sm:$0xff]  ;;  %v174_v25 = vld [vmem:[%s5271_s2 + $0xb0] sm:$0xff]  ;;  %v129_v40 = vunpack.c.l.s4 %v3619_v39  ;;  %vm140_vm6 = vcmask 1041408   ;;  %vm147_vm7 = vcmask 1043456   ;;  %vm473_vm8 = vcmask 1045504  }
  0x26   :  { %v171_v26 = vld [vmem:[%s5271_s2 + $0x98] sm:$0xff]  ;;  %v173_v27 = vld [vmem:[%s5271_s2 + $0xa8] sm:$0xff]  ;;  %v176_v28 = vld [vmem:[%s5271_s2 + $0xc0] sm:$0xff]  ;;  %v3769_v38 = vand.u32 127, %v28_v37  ;;  %v132_v43 = vshrl.u32 %v28_v37, 7  ;;  %vm424_vm9 = vcmask 97280  }
  0x27   :  { %266 = vperm.xlu1 %3020, %v168_v19   ;;  %v178_v29 = vld [vmem:[%s5271_s2 + $0xd0] sm:$0xff]  ;;  %v175_v30 = vld [vmem:[%s5271_s2 + $0xb8] sm:$0xff]  ;;  %v177_v31 = vld [vmem:[%s5271_s2 + $0xc8] sm:$0xff]  ;;  %v130_v42 = vunpack.c.0.s8 %v129_v40 }
  0x28   :  { %261 = vperm.xlu0 %3021, %v167_v22   ;;  %v180_v32 = vld [vmem:[%s5271_s2 + $0xe0] sm:$0xff]  ;;  %v182_v33 = vld [vmem:[%s5271_s2 + $0xf0] sm:$0xff]  ;;  %v179_v34 = vld [vmem:[%s5271_s2 + $0xd8] sm:$0xff]  ;;  %v30_v41 = vadd.s32 128, %v3769_v38  ;;  %vm113_vm0 = vcmp.lt.s32.totalorder %v3769_v38, 127  ;;  %vm57_vm2 = vcmp.ne.s32.totalorder %v3769_v38, 127 }
  0x29   :  { %v181_v35 = vld [vmem:[%s5271_s2 + $0xe8] sm:$0xff]  ;;  %v183_v36 = vld [vmem:[%s5271_s2 + $0xf8] sm:$0xff]  ;;  %v3774_v46 = vsub.s32 %v130_v42, %v132_v43  ;;  %vm100_vm3 = vcmp.lt.s32.totalorder %v3769_v38, 1  ;;  %vm55_vm5 = vcmp.ne.s32.totalorder %v3769_v38, 0  ;;  %v3503_v13 = vld [vmem:[%s5270_s1] sm:$0xff]  }
  0x2a   :  { %v42_v44 = vand.u32 127, %v30_v41  ;;  %v3504_v14 = vld [vmem:[%s5270_s1 + $0x40] sm:$0xff]   ;;  %v3505_v15 = vld [vmem:[%s5270_s1 + $0x8] sm:$0xff]   ;;  %v3507_v17 = vld [vmem:[%s5270_s1 + $0x10] sm:$0xff]  }
  0x2b   :  { %276 = vperm.xlu1 %3020, %v170_v21   ;;  %v134_v52 = vrot.slane %v127_v45, %v3774_v46  ;;  %v3506_v16 = vld [vmem:[%s5270_s1 + $0x48] sm:$0xff]   ;;  %v3508_v18 = vld [vmem:[%s5270_s1 + $0x50] sm:$0xff]   ;;  %v3509_v19 = vld [vmem:[%s5270_s1 + $0x18] sm:$0xff]  }
  0x2c   :  { %271 = vperm.xlu0 %3021, %v169_v23   ;;  %vm3777_vm1 = vcmp.ne.s32.totalorder %v42_v44, 127  ;;  %vm3792_vm4 = vcmp.ne.s32.totalorder %v42_v44, 0  ;;  %v3510_v20 = vld [vmem:[%s5270_s1 + $0x58] sm:$0xff]   ;;  %v3511_v21 = vld [vmem:[%s5270_s1 + $0x20] sm:$0xff]   ;;  %v3513_v23 = vld [vmem:[%s5270_s1 + $0x28] sm:$0xff]  }
  0x2d   :  { %v135_v0 = vcombine.high %v134_v52, %v134_v52  ;;  %v3512_v22 = vld [vmem:[%s5270_s1 + $0x60] sm:$0xff]   ;;  %vm4178_vm10 = vmpackc.low %vm3792_vm4, %vm3792_vm4 }
  0x2e   :  { %vm4193_vm11 = vmpackc.low %vm55_vm5, %vm55_vm5 }
  0x2f   :  { %286 = vperm.xlu1 %3020, %v172_v24   ;;  %v3514_v24 = vld [vmem:[%s5270_s1 + $0x68] sm:$0xff]   ;;  %vm4206_vm12 = vmpackc.low %vm3777_vm1, %vm3777_vm1 }
  0x30   :  { %281 = vperm.xlu0 %3021, %v171_v26   ;;  %v3516_v26 = vld [vmem:[%s5270_s1 + $0x70] sm:$0xff]   ;;  %vm4225_vm13 = vmpackc.low %vm57_vm2, %vm57_vm2 }
  0x33   :  { %296 = vperm.xlu1 %3020, %v174_v25   ;;  %v3515_v25 = vld [vmem:[%s5270_s1 + $0x30] sm:$0xff]  }
  0x34   :  { %291 = vperm.xlu0 %3021, %v173_v27   ;;  %v3517_v27 = vld [vmem:[%s5270_s1 + $0x38] sm:$0xff]  }
  0x37   :  { %306 = vperm.xlu1 %3020, %v176_v28   ;;  %v3518_v28 = vld [vmem:[%s5270_s1 + $0x78] sm:$0xff]  }
  0x38   :  { %301 = vperm.xlu0 %3021, %v175_v30  }
  0x3b   :  { %316 = vperm.xlu1 %3020, %v178_v29  }
  0x3c   :  { %311 = vperm.xlu0 %3021, %v177_v31  }
  0x3f   :  { %326 = vperm.xlu1 %3020, %v180_v32  }
  0x40   :  { %321 = vperm.xlu0 %3021, %v179_v34  }
  0x43   :  { %336 = vperm.xlu1 %3020, %v182_v33  }
  0x44   :  { %331 = vperm.xlu0 %3021, %v181_v35  }
  0x48   :  { %341 = vperm.xlu0 %3021, %v183_v36  }
  0x7a   :  { %v3012_v47 = vpop.permute.xlu0 %3011 }
  0x7b   :  { %v3014_v48 = vunpack.i.h.bf16 %v3012_v47  ;;  %v3013_v49 = vunpack.i.l.bf16 %v3012_v47 }
  0x7d   :  { %v115_v51 = vsel %vm113_vm0, %v3014_v48, %v3013_v49  ;;  %v114_v53 = vsel %vm113_vm0, %v3013_v49, %v3014_v48 }
  0x7e   :  { %v3017_v54 = vpop.permute.xlu0 %3016  ;;  %v121_v55 = vsel %vm3777_vm1, %v115_v51, 0.0  ;;  %v120_v56 = vsel %vm57_vm2, %v114_v53, 0.0 }
  0x7f   :  { %v3019_v57 = vunpack.i.h.bf16 %v3017_v54  ;;  %v3018_v58 = vunpack.i.l.bf16 %v3017_v54  ;;  %v125_v60 = vpack.c.bf16 %v121_v55, %v121_v55  ;;  %v124_v61 = vpack.c.bf16 %v120_v56, %v120_v56 }
  0x81   :  { %v101_v62 = vsel %vm100_vm3, %v3018_v58, %v3019_v57  ;;  %v102_v63 = vsel %vm100_vm3, %v3019_v57, %v3018_v58  ;;  %v139_v6 = vrot.slane %v125_v60, 4  ;;  %v138_v7 = vrot.slane %v124_v61, 4 }
  0x82   :  { %v108_v1 = vsel %vm3792_vm4, %v101_v62, 0.0  ;;  %v107_v2 = vsel %vm55_vm5, %v102_v63, 0.0  ;;  %v187_v29 = vpop.permute.xlu1 %186 }
  0x83   :  { %v123_v4 = vpack.c.bf16 %v108_v1, %v108_v1  ;;  %v122_v5 = vpack.c.bf16 %v107_v2, %v107_v2 }
  0x85   :  { %v146_v8 = vsel %vm140_vm6, %v123_v4, %v135_v0  ;;  %v143_v9 = vsel %vm140_vm6, %v122_v5, %v134_v52 }
  0x86   :  { %v151_v10 = vsel %vm147_vm7, %v146_v8, %v139_v6  ;;  %v149_v11 = vsel %vm147_vm7, %v143_v9, %v138_v7  ;;  %v192_v30 = vpop.permute.xlu1 %191 }
  0x87   :  { %2548 = vmatprep.subr.msk.bf16.mxu0 %vm473_vm8, %v151_v10  ;;  %2901 = vmatprep.subr.msk.bf16.mxu1 %vm473_vm8, %v151_v10  ;;  %v474_v12 = vsel %vm473_vm8, %v149_v11, 0 }
  0x88   :  { %479 = vmatpush1.bf16.msra.mxu0 %v474_v12  ;;  %2902 = vmatpush1.bf16.msra.mxu1 %v474_v12 }
  0x8a   :  { %v3883_v31 = vpop.permute.xlu1 %201 }
  0x8b   :  { %2549 = vmatmul.mubr.msk.bf16.vlgmr.msra.gmra.mrb[0].mxu0 %vm424_vm9, %v3503_v13  ;;  %2557 = vmatmul.mubr.msk.bf16.vlgmr.msra.gmra.mrb[0].mxu1 %vm424_vm9, %v3504_v14 }
  0x8c   :  { %520 = vmatprep.mubr.bf16.mxu0 %v3616_v3  ;;  %600 = vmatprep.mubr.bf16.mxu1 %v3616_v3 }
  0x8e   :  { %v3885_v33 = vpop.permute.xlu1 %206 }
  0x8f   :  { %v197_v32 = vpop.permute.xlu0 %196 }
  0x92   :  { %v3889_v35 = vpop.permute.xlu1 %216 }
  0x93   :  { %2550 = vmatmul.mubr.msk.bf16.gmra.mrb[4].mxu0 %vm424_vm9, %v3505_v15  ;;  %2558 = vmatmul.mubr.msk.bf16.gmra.mrb[4].mxu1 %vm424_vm9, %v3506_v16  ;;  %v3887_v34 = vpop.permute.xlu0 %211 }
  0x94   :  { %530 = vmatprep.mubr.bf16.mxu0 %v3616_v3  ;;  %610 = vmatprep.mubr.bf16.mxu1 %v3616_v3 }
  0x96   :  { %v3893_v37 = vpop.permute.xlu1 %226 }
  0x97   :  { %v3891_v36 = vpop.permute.xlu0 %221 }
  0x9a   :  { %v3897_v40 = vpop.permute.xlu1 %236 }
  0x9b   :  { %2551 = vmatmul.mubr.msk.bf16.gmra.mrb[8].mxu0 %vm424_vm9, %v3507_v17  ;;  %2559 = vmatmul.mubr.msk.bf16.gmra.mrb[8].mxu1 %vm424_vm9, %v3508_v18  ;;  %v3895_v39 = vpop.permute.xlu0 %231 }
  0x9c   :  { %540 = vmatprep.mubr.bf16.mxu0 %v3616_v3  ;;  %620 = vmatprep.mubr.bf16.mxu1 %v3616_v3 }
  0x9e   :  { %v3901_v42 = vpop.permute.xlu1 %246 }
  0x9f   :  { %v3899_v41 = vpop.permute.xlu0 %241 }
  0xa2   :  { %v3905_v44 = vpop.permute.xlu1 %256 }
  0xa3   :  { %2552 = vmatmul.mubr.msk.bf16.gmra.mrb[12].mxu0 %vm424_vm9, %v3509_v19  ;;  %2560 = vmatmul.mubr.msk.bf16.gmra.mrb[12].mxu1 %vm424_vm9, %v3510_v20  ;;  %v3903_v43 = vpop.permute.xlu0 %251 }
  0xa4   :  { %550 = vmatprep.mubr.bf16.mxu0 %v3616_v3  ;;  %630 = vmatprep.mubr.bf16.mxu1 %v3616_v3 }
  0xa6   :  { %v267_v47 = vpop.permute.xlu1 %266 }
  0xa7   :  { %v3907_v45 = vpop.permute.xlu0 %261 }
  0xaa   :  { %v277_v12 = vpop.permute.xlu1 %276 }
  0xab   :  { %2553 = vmatmul.mubr.msk.bf16.gmra.mrb[16].mxu0 %vm424_vm9, %v3511_v21  ;;  %2561 = vmatmul.mubr.msk.bf16.gmra.mrb[16].mxu1 %vm424_vm9, %v3512_v22  ;;  %v272_v48 = vpop.permute.xlu0 %271  ;;  %v3521_v22 = vld [vmem:[%s5272_s3 + $0xc] ss:$24 sps:$4 sm:$0xff]  }
  0xac   :  { %560 = vmatprep.mubr.bf16.mxu0 %v3616_v3  ;;  %640 = vmatprep.mubr.bf16.mxu1 %v3616_v3 }
  0xaf   :  { %v282_v13 = vpop.permute.xlu0 %281 }
  0xb3   :  { %2554 = vmatmul.mubr.msk.bf16.gmra.mrb[20].mxu0 %vm424_vm9, %v3513_v23  ;;  %2562 = vmatmul.mubr.msk.bf16.gmra.mrb[20].mxu1 %vm424_vm9, %v3514_v24 }
  0xb4   :  { %570 = vmatprep.mubr.bf16.mxu0 %v3616_v3  ;;  %650 = vmatprep.mubr.bf16.mxu1 %v3616_v3 }
  0xbb   :  { %2555 = vmatmul.mubr.msk.bf16.gmra.mrb[24].mxu0 %vm424_vm9, %v3515_v25  ;;  %2563 = vmatmul.mubr.msk.bf16.gmra.mrb[24].mxu1 %vm424_vm9, %v3516_v26 }
  0xbc   :  { %580 = vmatprep.mubr.bf16.mxu0 %v3616_v3  ;;  %660 = vmatprep.mubr.bf16.mxu1 %v3616_v3 }
  0xc3   :  { %2556 = vmatmul.mubr.msk.bf16.gmra.mrb[28].mxu0 %vm424_vm9, %v3517_v27  ;;  %2564 = vmatmul.mubr.msk.bf16.gmra.mrb[28].mxu1 %vm424_vm9, %v3518_v28 }
  0xc4   :  { %1872 = vmatprep.mubr.bf16.mxu1 %v3521_v22 }
 0x15e   :  { %v512_v49 = vpop.f32.mrb[0].mxu0  ;;  %v592_v51 = vpop.f32.mrb[0].mxu1 }
 0x15f   :  { %v513_v52 = vadd.f32 %v512_v49, %v187_v29  ;;  %v593_v53 = vadd.f32 %v592_v51, %v267_v47  ;;  %v514_v54 = vpop.f32.mrb[1].mxu0  ;;  %v594_v55 = vpop.f32.mrb[1].mxu1 }
 0x160   :  { %v515_v56 = vadd.f32 %v514_v54, %v187_v29  ;;  %v595_v57 = vadd.f32 %v594_v55, %v267_v47  ;;  %v516_v58 = vpop.f32.mrb[2].mxu0  ;;  %v596_v60 = vpop.f32.mrb[2].mxu1 }
 0x161   :  { %v517_v61 = vadd.f32 %v516_v58, %v192_v30  ;;  %v597_v62 = vadd.f32 %v596_v60, %v272_v48  ;;  %v518_v63 = vpop.f32.mrb[3].mxu0  ;;  %v598_v0 = vpop.f32.mrb[3].mxu1  ;;  %v671_v4 = vmax.f32 %v513_v52, 0.0  ;;  %v703_v5 = vmax.f32 %v593_v53, 0.0 }
 0x162   :  { %v519_v1 = vadd.f32 %v518_v63, %v192_v30  ;;  %v599_v2 = vadd.f32 %v598_v0, %v272_v48  ;;  %v672_v8 = vmax.f32 %v515_v56, 0.0  ;;  %v704_v9 = vmax.f32 %v595_v57, 0.0  ;;  %v287_v0 = vpop.permute.xlu1 %286 }
 0x163   :  { %v673_v6 = vmax.f32 %v517_v61, 0.0  ;;  %v705_v7 = vmax.f32 %v597_v62, 0.0 }
 0x164   :  { %v674_v10 = vmax.f32 %v519_v1, 0.0  ;;  %v706_v11 = vmax.f32 %v599_v2, 0.0  ;;  %v292_v1 = vpop.permute.xlu0 %291 }
 0x165   :  { %v1327_v14 = vpack.c.bf16 %v673_v6, %v671_v4  ;;  %v3909_v15 = vpack.c.bf16 %v705_v7, %v703_v5  ;;  %v3022_v16 = vpack.i.bf16 %v673_v6, %v671_v4  ;;  %v3911_v21 = vpack.i.bf16 %v705_v7, %v703_v5 }
 0x166   :  { %v522_v17 = vpop.f32.mrb[4].mxu0  ;;  %v602_v18 = vpop.f32.mrb[4].mxu1  ;;  %v3042_v19 = vpack.i.bf16 %v674_v10, %v672_v8  ;;  %v1328_v20 = vpack.c.bf16 %v674_v10, %v672_v8  ;;  %v3917_v27 = vpack.i.bf16 %v706_v11, %v704_v9  ;;  %v3923_v58 = vpack.c.bf16 %v706_v11, %v704_v9 }
 0x167   :  { %v523_v23 = vadd.f32 %v522_v17, %v197_v32  ;;  %v603_v24 = vadd.f32 %v602_v18, %v277_v12  ;;  %v524_v25 = vpop.f32.mrb[5].mxu0  ;;  %v604_v26 = vpop.f32.mrb[5].mxu1  ;;  %3023 = vrot.lane.b32.xlu1 %v3022_v16, %s3618_s9 }
 0x168   :  { %v525_v28 = vadd.f32 %v524_v25, %v197_v32  ;;  %v605_v29 = vadd.f32 %v604_v26, %v277_v12  ;;  %v526_v30 = vpop.f32.mrb[6].mxu0  ;;  %v606_v47 = vpop.f32.mrb[6].mxu1  ;;  %3043 = vrot.lane.b32.xlu0 %v3042_v19, %s3618_s9  ;;  %1840 = vmatprep.subr.bf16.mxu1 %v1328_v20 }
 0x169   :  { %v527_v48 = vadd.f32 %v526_v30, %v3883_v31  ;;  %v607_v49 = vadd.f32 %v606_v47, %v282_v13  ;;  %v528_v51 = vpop.f32.mrb[7].mxu0  ;;  %v608_v52 = vpop.f32.mrb[7].mxu1  ;;  %1841 = vmatpush1.bf16.msra.mxu1 %v1327_v14  ;;  %v675_v53 = vmax.f32 %v523_v23, 0.0  ;;  %v707_v56 = vmax.f32 %v603_v24, 0.0 }
 0x16a   :  { %v529_v54 = vadd.f32 %v528_v51, %v3883_v31  ;;  %v609_v55 = vadd.f32 %v608_v52, %v282_v13  ;;  %v676_v60 = vmax.f32 %v525_v28, 0.0  ;;  %v708_v61 = vmax.f32 %v605_v29, 0.0 }
 0x16b   :  { %v677_v57 = vmax.f32 %v527_v48, 0.0  ;;  %v709_v32 = vmax.f32 %v607_v49, 0.0  ;;  %3028 = vrot.lane.b32.xlu1 %v3022_v16, %s3617_s0 }
 0x16c   :  { %v678_v62 = vmax.f32 %v529_v54, 0.0  ;;  %v710_v63 = vmax.f32 %v609_v55, 0.0  ;;  %3048 = vrot.lane.b32.xlu0 %v3042_v19, %s3617_s0  ;;  %v302_v54 = vpop.permute.xlu0 %301 }
 0x16d   :  { %v1329_v2 = vpack.c.bf16 %v677_v57, %v675_v53  ;;  %v3926_v4 = vpack.c.bf16 %v709_v32, %v707_v56  ;;  %v3928_v31 = vpack.i.bf16 %v677_v57, %v675_v53  ;;  %v3932_v9 = vpack.i.bf16 %v709_v32, %v707_v56  ;;  %v297_v53 = vpop.permute.xlu1 %296 }
 0x16e   :  { %v532_v5 = vpop.f32.mrb[8].mxu0  ;;  %v612_v6 = vpop.f32.mrb[8].mxu1  ;;  %v1330_v7 = vpack.c.bf16 %v678_v62, %v676_v60  ;;  %v3930_v8 = vpack.i.bf16 %v678_v62, %v676_v60  ;;  %v3937_v14 = vpack.i.bf16 %v710_v63, %v708_v61  ;;  %v3946_v47 = vpack.c.bf16 %v710_v63, %v708_v61 }
 0x16f   :  { %v533_v10 = vadd.f32 %v532_v5, %v3885_v33  ;;  %v613_v11 = vadd.f32 %v612_v6, %v287_v0  ;;  %v534_v12 = vpop.f32.mrb[9].mxu0  ;;  %v614_v13 = vpop.f32.mrb[9].mxu1  ;;  %3033 = vrot.lane.b32.xlu1 %v3911_v21, %s3618_s9 }
 0x170   :  { %v535_v16 = vadd.f32 %v534_v12, %v3885_v33  ;;  %v615_v17 = vadd.f32 %v614_v13, %v287_v0  ;;  %v536_v18 = vpop.f32.mrb[10].mxu0  ;;  %v616_v19 = vpop.f32.mrb[10].mxu1  ;;  %3053 = vrot.lane.b32.xlu0 %v3917_v27, %s3618_s9  ;;  %1842 = vmatprep.subr.bf16.mxu1 %v1330_v7 }
 0x171   :  { %v537_v20 = vadd.f32 %v536_v18, %v3887_v34  ;;  %v617_v22 = vadd.f32 %v616_v19, %v292_v1  ;;  %v538_v23 = vpop.f32.mrb[11].mxu0  ;;  %v618_v24 = vpop.f32.mrb[11].mxu1  ;;  %1843 = vmatpush1.bf16.msra.mxu1 %v1329_v2  ;;  %v679_v25 = vmax.f32 %v533_v10, 0.0  ;;  %v711_v29 = vmax.f32 %v613_v11, 0.0 }
 0x172   :  { %v539_v26 = vadd.f32 %v538_v23, %v3887_v34  ;;  %v619_v28 = vadd.f32 %v618_v24, %v292_v1  ;;  %v680_v48 = vmax.f32 %v535_v16, 0.0  ;;  %v712_v49 = vmax.f32 %v615_v17, 0.0 }
 0x173   :  { %v681_v30 = vmax.f32 %v537_v20, 0.0  ;;  %v713_v33 = vmax.f32 %v617_v22, 0.0  ;;  %3038 = vrot.lane.b32.xlu1 %v3911_v21, %s3617_s0 }
 0x174   :  { %v682_v51 = vmax.f32 %v539_v26, 0.0  ;;  %v714_v52 = vmax.f32 %v619_v28, 0.0  ;;  %3058 = vrot.lane.b32.xlu0 %v3917_v27, %s3617_s0  ;;  %v307_v28 = vpop.permute.xlu1 %306 }
 0x175   :  { %v1331_v55 = vpack.c.bf16 %v681_v30, %v679_v25  ;;  %v3950_v34 = vpack.c.bf16 %v713_v33, %v711_v29  ;;  %v3952_v56 = vpack.i.bf16 %v681_v30, %v679_v25  ;;  %v3956_v61 = vpack.i.bf16 %v713_v33, %v711_v29  ;;  %v312_v29 = vpop.permute.xlu0 %311 }
 0x176   :  { %v542_v57 = vpop.f32.mrb[12].mxu0  ;;  %v622_v32 = vpop.f32.mrb[12].mxu1  ;;  %v1332_v60 = vpack.c.bf16 %v682_v51, %v680_v48  ;;  %v3954_v21 = vpack.i.bf16 %v682_v51, %v680_v48  ;;  %v3961_v27 = vpack.i.bf16 %v714_v52, %v712_v49  ;;  %v3970_v22 = vpack.c.bf16 %v714_v52, %v712_v49 }
 0x177   :  { %v543_v62 = vadd.f32 %v542_v57, %v3889_v35  ;;  %v623_v63 = vadd.f32 %v622_v32, %v297_v53  ;;  %v544_v0 = vpop.f32.mrb[13].mxu0  ;;  %v624_v1 = vpop.f32.mrb[13].mxu1  ;;  %3063 = vrot.lane.b32.xlu1 %v3928_v31, %s3618_s9 }
 0x178   :  { %v545_v2 = vadd.f32 %v544_v0, %v3889_v35  ;;  %v625_v5 = vadd.f32 %v624_v1, %v297_v53  ;;  %v546_v6 = vpop.f32.mrb[14].mxu0  ;;  %v626_v7 = vpop.f32.mrb[14].mxu1  ;;  %3083 = vrot.lane.b32.xlu0 %v3930_v8, %s3618_s9  ;;  %1844 = vmatprep.subr.bf16.mxu1 %v1332_v60 }
 0x179   :  { %v547_v10 = vadd.f32 %v546_v6, %v3891_v36  ;;  %v627_v11 = vadd.f32 %v626_v7, %v302_v54  ;;  %v548_v12 = vpop.f32.mrb[15].mxu0  ;;  %v628_v13 = vpop.f32.mrb[15].mxu1  ;;  %1845 = vmatpush1.bf16.msra.mxu1 %v1331_v55  ;;  %v683_v16 = vmax.f32 %v543_v62, 0.0  ;;  %v715_v19 = vmax.f32 %v623_v63, 0.0 }
 0x17a   :  { %v549_v17 = vadd.f32 %v548_v12, %v3891_v36  ;;  %v629_v18 = vadd.f32 %v628_v13, %v302_v54  ;;  %v684_v23 = vmax.f32 %v545_v2, 0.0  ;;  %v716_v24 = vmax.f32 %v625_v5, 0.0 }
 0x17b   :  { %v685_v20 = vmax.f32 %v547_v10, 0.0  ;;  %v717_v35 = vmax.f32 %v627_v11, 0.0  ;;  %3068 = vrot.lane.b32.xlu1 %v3928_v31, %s3617_s0 }
 0x17c   :  { %v686_v25 = vmax.f32 %v549_v17, 0.0  ;;  %v718_v26 = vmax.f32 %v629_v18, 0.0  ;;  %3088 = vrot.lane.b32.xlu0 %v3930_v8, %s3617_s0 }
 0x17d   :  { %v1333_v30 = vpack.c.bf16 %v685_v20, %v683_v16  ;;  %v3974_v36 = vpack.c.bf16 %v717_v35, %v715_v19  ;;  %v3976_v33 = vpack.i.bf16 %v685_v20, %v683_v16  ;;  %v3980_v49 = vpack.i.bf16 %v717_v35, %v715_v19  ;;  %v317_v20 = vpop.permute.xlu1 %316  ;;  %v322_v35 = vpop.permute.xlu0 %321 }
 0x17e   :  { %v552_v48 = vpop.f32.mrb[16].mxu0  ;;  %v632_v51 = vpop.f32.mrb[16].mxu1  ;;  %v1334_v53 = vpack.c.bf16 %v686_v25, %v684_v23  ;;  %v3978_v31 = vpack.i.bf16 %v686_v25, %v684_v23  ;;  %v3985_v8 = vpack.i.bf16 %v718_v26, %v716_v24  ;;  %v3994_v13 = vpack.c.bf16 %v718_v26, %v716_v24 }
 0x17f   :  { %v553_v52 = vadd.f32 %v552_v48, %v3893_v37  ;;  %v633_v54 = vadd.f32 %v632_v51, %v307_v28  ;;  %v554_v55 = vpop.f32.mrb[17].mxu0  ;;  %v634_v57 = vpop.f32.mrb[17].mxu1  ;;  %3073 = vrot.lane.b32.xlu1 %v3932_v9, %s3618_s9 }
 0x180   :  { %v555_v32 = vadd.f32 %v554_v55, %v3893_v37  ;;  %v635_v60 = vadd.f32 %v634_v57, %v307_v28  ;;  %v556_v62 = vpop.f32.mrb[18].mxu0  ;;  %v636_v63 = vpop.f32.mrb[18].mxu1  ;;  %3093 = vrot.lane.b32.xlu0 %v3937_v14, %s3618_s9  ;;  %1846 = vmatprep.subr.bf16.mxu1 %v1334_v53 }
 0x181   :  { %v557_v0 = vadd.f32 %v556_v62, %v3895_v39  ;;  %v637_v1 = vadd.f32 %v636_v63, %v312_v29  ;;  %v558_v2 = vpop.f32.mrb[19].mxu0  ;;  %v638_v5 = vpop.f32.mrb[19].mxu1  ;;  %1847 = vmatpush1.bf16.msra.mxu1 %v1333_v30  ;;  %v687_v6 = vmax.f32 %v553_v52, 0.0  ;;  %v719_v11 = vmax.f32 %v633_v54, 0.0 }
 0x182   :  { %v559_v7 = vadd.f32 %v558_v2, %v3895_v39  ;;  %v639_v10 = vadd.f32 %v638_v5, %v312_v29  ;;  %v688_v16 = vmax.f32 %v555_v32, 0.0  ;;  %v720_v17 = vmax.f32 %v635_v60, 0.0 }
 0x183   :  { %v689_v12 = vmax.f32 %v557_v0, 0.0  ;;  %v721_v37 = vmax.f32 %v637_v1, 0.0  ;;  %3078 = vrot.lane.b32.xlu1 %v3932_v9, %s3617_s0 }
 0x184   :  { %v690_v18 = vmax.f32 %v559_v7, 0.0  ;;  %v722_v19 = vmax.f32 %v639_v10, 0.0  ;;  %3098 = vrot.lane.b32.xlu0 %v3937_v14, %s3617_s0 }
 0x185   :  { %v1335_v23 = vpack.c.bf16 %v689_v12, %v687_v6  ;;  %v3998_v39 = vpack.c.bf16 %v721_v37, %v719_v11  ;;  %v4000_v25 = vpack.i.bf16 %v689_v12, %v687_v6  ;;  %v4009_v14 = vpack.i.bf16 %v721_v37, %v719_v11 }
 0x186   :  { %v562_v28 = vpop.f32.mrb[20].mxu0  ;;  %v642_v29 = vpop.f32.mrb[20].mxu1  ;;  %v1336_v30 = vpack.c.bf16 %v690_v18, %v688_v16  ;;  %v4002_v9 = vpack.i.bf16 %v690_v18, %v688_v16  ;;  %v4004_v24 = vpack.c.bf16 %v722_v19, %v720_v17  ;;  %v4011_v52 = vpack.i.bf16 %v722_v19, %v720_v17 }
 0x187   :  { %v563_v26 = vadd.f32 %v562_v28, %v3897_v40  ;;  %v643_v48 = vadd.f32 %v642_v29, %v317_v20  ;;  %v564_v51 = vpop.f32.mrb[21].mxu0  ;;  %v644_v53 = vpop.f32.mrb[21].mxu1  ;;  %3103 = vrot.lane.b32.xlu1 %v3952_v56, %s3618_s9 }
 0x188   :  { %v565_v54 = vadd.f32 %v564_v51, %v3897_v40  ;;  %v645_v55 = vadd.f32 %v644_v53, %v317_v20  ;;  %v566_v57 = vpop.f32.mrb[22].mxu0  ;;  %v646_v32 = vpop.f32.mrb[22].mxu1  ;;  %3123 = vrot.lane.b32.xlu0 %v3954_v21, %s3618_s9  ;;  %1848 = vmatprep.subr.bf16.mxu1 %v1336_v30 }
 0x189   :  { %v567_v60 = vadd.f32 %v566_v57, %v3899_v41  ;;  %v647_v62 = vadd.f32 %v646_v32, %v322_v35  ;;  %v568_v63 = vpop.f32.mrb[23].mxu0  ;;  %v648_v0 = vpop.f32.mrb[23].mxu1  ;;  %1849 = vmatpush1.bf16.msra.mxu1 %v1335_v23  ;;  %v691_v1 = vmax.f32 %v563_v26, 0.0  ;;  %v723_v6 = vmax.f32 %v643_v48, 0.0 }
 0x18a   :  { %v569_v2 = vadd.f32 %v568_v63, %v3899_v41  ;;  %v649_v5 = vadd.f32 %v648_v0, %v322_v35  ;;  %v692_v10 = vmax.f32 %v565_v54, 0.0  ;;  %v724_v11 = vmax.f32 %v645_v55, 0.0  ;;  %v327_v16 = vpop.permute.xlu1 %326  ;;  %v332_v17 = vpop.permute.xlu0 %331 }
 0x18b   :  { %v693_v7 = vmax.f32 %v567_v60, 0.0  ;;  %v725_v40 = vmax.f32 %v647_v62, 0.0  ;;  %3108 = vrot.lane.b32.xlu1 %v3952_v56, %s3617_s0 }
 0x18c   :  { %v694_v12 = vmax.f32 %v569_v2, 0.0  ;;  %v726_v37 = vmax.f32 %v649_v5, 0.0  ;;  %3128 = vrot.lane.b32.xlu0 %v3954_v21, %s3617_s0 }
 0x18d   :  { %v1337_v18 = vpack.c.bf16 %v693_v7, %v691_v1  ;;  %v4022_v19 = vpack.c.bf16 %v725_v40, %v723_v6  ;;  %v4024_v41 = vpack.i.bf16 %v693_v7, %v691_v1  ;;  %v4033_v21 = vpack.i.bf16 %v725_v40, %v723_v6 }
 0x18e   :  { %v572_v20 = vpop.f32.mrb[24].mxu0  ;;  %v652_v35 = vpop.f32.mrb[24].mxu1  ;;  %v1338_v23 = vpack.c.bf16 %v694_v12, %v692_v10  ;;  %v4026_v28 = vpack.i.bf16 %v694_v12, %v692_v10  ;;  %v4028_v56 = vpack.c.bf16 %v726_v37, %v724_v11  ;;  %v4035_v51 = vpack.i.bf16 %v726_v37, %v724_v11 }
 0x18f   :  { %v573_v29 = vadd.f32 %v572_v20, %v3901_v42  ;;  %v653_v30 = vadd.f32 %v652_v35, %v327_v16  ;;  %v574_v26 = vpop.f32.mrb[25].mxu0  ;;  %v654_v48 = vpop.f32.mrb[25].mxu1  ;;  %3113 = vrot.lane.b32.xlu1 %v3956_v61, %s3618_s9 }
 0x190   :  { %v575_v53 = vadd.f32 %v574_v26, %v3901_v42  ;;  %v655_v54 = vadd.f32 %v654_v48, %v327_v16  ;;  %v576_v55 = vpop.f32.mrb[26].mxu0  ;;  %v656_v57 = vpop.f32.mrb[26].mxu1  ;;  %3133 = vrot.lane.b32.xlu0 %v3961_v27, %s3618_s9  ;;  %1850 = vmatprep.subr.bf16.mxu1 %v1338_v23 }
 0x191   :  { %v577_v32 = vadd.f32 %v576_v55, %v3903_v43  ;;  %v657_v60 = vadd.f32 %v656_v57, %v332_v17  ;;  %v578_v62 = vpop.f32.mrb[27].mxu0  ;;  %v658_v63 = vpop.f32.mrb[27].mxu1  ;;  %1851 = vmatpush1.bf16.msra.mxu1 %v1337_v18  ;;  %v695_v0 = vmax.f32 %v573_v29, 0.0  ;;  %v727_v5 = vmax.f32 %v653_v30, 0.0 }
 0x192   :  { %v579_v1 = vadd.f32 %v578_v62, %v3903_v43  ;;  %v659_v2 = vadd.f32 %v658_v63, %v332_v17  ;;  %v696_v7 = vmax.f32 %v575_v53, 0.0  ;;  %v728_v40 = vmax.f32 %v655_v54, 0.0  ;;  %v337_v12 = vpop.permute.xlu1 %336  ;;  %v342_v37 = vpop.permute.xlu0 %341 }
 0x193   :  { %v697_v6 = vmax.f32 %v577_v32, 0.0  ;;  %v729_v42 = vmax.f32 %v657_v60, 0.0  ;;  %3118 = vrot.lane.b32.xlu1 %v3956_v61, %s3617_s0 }
 0x194   :  { %v698_v10 = vmax.f32 %v579_v1, 0.0  ;;  %v730_v11 = vmax.f32 %v659_v2, 0.0  ;;  %3138 = vrot.lane.b32.xlu0 %v3961_v27, %s3617_s0 }
 0x195   :  { %v1339_v16 = vpack.c.bf16 %v697_v6, %v695_v0  ;;  %v4046_v18 = vpack.c.bf16 %v729_v42, %v727_v5  ;;  %v4048_v43 = vpack.i.bf16 %v697_v6, %v695_v0  ;;  %v4057_v27 = vpack.i.bf16 %v729_v42, %v727_v5 }
 0x196   :  { %v582_v17 = vpop.f32.mrb[28].mxu0  ;;  %v662_v20 = vpop.f32.mrb[28].mxu1  ;;  %v1340_v35 = vpack.c.bf16 %v698_v10, %v696_v7  ;;  %v4050_v23 = vpack.i.bf16 %v698_v10, %v696_v7  ;;  %v4052_v61 = vpack.c.bf16 %v730_v11, %v728_v40  ;;  %v4059_v53 = vpack.i.bf16 %v730_v11, %v728_v40 }
 0x197   :  { %v583_v29 = vadd.f32 %v582_v17, %v3905_v44  ;;  %v663_v30 = vadd.f32 %v662_v20, %v337_v12  ;;  %v584_v26 = vpop.f32.mrb[29].mxu0  ;;  %v664_v48 = vpop.f32.mrb[29].mxu1  ;;  %3143 = vrot.lane.b32.xlu1 %v3976_v33, %s3618_s9 }
 0x198   :  { %v585_v54 = vadd.f32 %v584_v26, %v3905_v44  ;;  %v665_v55 = vadd.f32 %v664_v48, %v337_v12  ;;  %v586_v57 = vpop.f32.mrb[30].mxu0  ;;  %v666_v32 = vpop.f32.mrb[30].mxu1  ;;  %3163 = vrot.lane.b32.xlu0 %v3978_v31, %s3618_s9  ;;  %1852 = vmatprep.subr.bf16.mxu1 %v1340_v35 }
 0x199   :  { %v587_v60 = vadd.f32 %v586_v57, %v3907_v45  ;;  %v667_v62 = vadd.f32 %v666_v32, %v342_v37  ;;  %v588_v63 = vpop.f32.mrb[31].mxu0  ;;  %v668_v0 = vpop.f32.mrb[31].mxu1  ;;  %1853 = vmatpush1.bf16.msra.mxu1 %v1339_v16  ;;  %v699_v1 = vmax.f32 %v583_v29, 0.0  ;;  %v731_v6 = vmax.f32 %v663_v30, 0.0 }
 0x19a   :  { %v589_v2 = vadd.f32 %v588_v63, %v3907_v45  ;;  %v669_v5 = vadd.f32 %v668_v0, %v342_v37  ;;  %v700_v7 = vmax.f32 %v585_v54, 0.0  ;;  %v732_v40 = vmax.f32 %v665_v55, 0.0  ;;  %v1391_v63 = vld [vmem:[%s5273_s4] sm:$0xff] }
 0x19b   :  { %v701_v42 = vmax.f32 %v587_v60, 0.0  ;;  %v733_v44 = vmax.f32 %v667_v62, 0.0  ;;  %3148 = vrot.lane.b32.xlu1 %v3976_v33, %s3617_s0  ;;  %v3533_v60 = vld [vmem:[%s5272_s3 + $0xc8] ss:$24 sps:$4 sm:$0xff]   ;;  %v3534_v62 = vld [vmem:[%s5272_s3 + $0xfc] ss:$24 sps:$4 sm:$0xff]  }
 0x19c   :  { %v702_v10 = vmax.f32 %v589_v2, 0.0  ;;  %v734_v11 = vmax.f32 %v669_v5, 0.0  ;;  %3168 = vrot.lane.b32.xlu0 %v3978_v31, %s3617_s0  ;;  %v3531_v31 = vld [vmem:[%s5272_s3 + $0xcc] ss:$24 sps:$4 sm:$0xff]   ;;  %v1393_v5 = vld [vmem:[%s5273_s4 + $0x10] sm:$0xff] }
 0x19d   :  { %v1341_v12 = vpack.c.bf16 %v701_v42, %v699_v1  ;;  %v1357_v17 = vpack.c.bf16 %v733_v44, %v731_v6  ;;  %v3242_v16 = vpack.i.bf16 %v701_v42, %v699_v1  ;;  %v4072_v37 = vpack.i.bf16 %v733_v44, %v731_v6  ;;  %v1392_v1 = vld [vmem:[%s5273_s4 + $0x8] sm:$0xff]  ;;  %v1394_v42 = vld [vmem:[%s5273_s4 + $0x18] sm:$0xff] }
 0x19e   :  { %v1342_v20 = vpack.c.bf16 %v702_v10, %v700_v7  ;;  %v1358_v35 = vpack.c.bf16 %v734_v11, %v732_v40  ;;  %v3257_v45 = vpack.i.bf16 %v702_v10, %v700_v7  ;;  %v4074_v29 = vpack.i.bf16 %v734_v11, %v732_v40  ;;  %v3536_v10 = vld [vmem:[%s5272_s3 + $0xf8] ss:$24 sps:$4 sm:$0xff]  }
 0x19f   :  { %3153 = vrot.lane.b32.xlu1 %v3980_v49, %s3618_s9 }
 0x1a0   :  { %3173 = vrot.lane.b32.xlu0 %v3985_v8, %s3618_s9  ;;  %1854 = vmatprep.subr.bf16.mxu1 %v1342_v20 }
 0x1a1   :  { %1855 = vmatpush1.bf16.msra.mxu1 %v1341_v12 }
 0x1a2   :  { %1856 = vmatprep.subr.bf16.mxu1 %v3923_v58  ;;  %v3522_v58 = vld [vmem:[%s5272_s3 + $0x3c] ss:$24 sps:$4 sm:$0xff]  }
 0x1a3   :  { %3158 = vrot.lane.b32.xlu1 %v3980_v49, %s3617_s0 }
 0x1a4   :  { %3178 = vrot.lane.b32.xlu0 %v3985_v8, %s3617_s0 }
 0x1a5   :  { %1857 = vmatpush1.bf16.msra.mxu1 %v3909_v15  ;;  %v3519_v15 = vld [vmem:[%s5272_s3 + $0x8] ss:$24 sps:$4 sm:$0xff]  }
 0x1a6   :  { %1858 = vmatprep.subr.bf16.mxu1 %v3946_v47  ;;  %v3525_v47 = vld [vmem:[%s5272_s3 + $0x6c] ss:$24 sps:$4 sm:$0xff]  }
 0x1a7   :  { %3183 = vrot.lane.b32.xlu1 %v4000_v25, %s3618_s9 }
 0x1a8   :  { %3193 = vrot.lane.b32.xlu0 %v4002_v9, %s3618_s9 }
 0x1a9   :  { %1859 = vmatpush1.bf16.msra.mxu1 %v3926_v4  ;;  %v3524_v4 = vld [vmem:[%s5272_s3 + $0x38] ss:$24 sps:$4 sm:$0xff]  }
 0x1aa   :  { %1860 = vmatprep.subr.bf16.mxu1 %v3970_v22  ;;  %v3528_v22 = vld [vmem:[%s5272_s3 + $0x9c] ss:$24 sps:$4 sm:$0xff]  }
 0x1ab   :  { %3188 = vrot.lane.b32.xlu1 %v4000_v25, %s3617_s0 }
 0x1ac   :  { %3198 = vrot.lane.b32.xlu0 %v4002_v9, %s3617_s0  ;;  %v3545_v9 = vld [vmem:[%s5272_s3 + $0x4] ss:$24 sps:$4 sm:$0xff]  }
 0x1ad   :  { %1861 = vmatpush1.bf16.msra.mxu1 %v3950_v34  ;;  %v3527_v34 = vld [vmem:[%s5272_s3 + $0x68] ss:$24 sps:$4 sm:$0xff]   ;;  %1759 = vmatprep.mubr.bf16.mxu0 %v3545_v9  ;;  %v1398_v9 = vld [vmem:[%s5273_s4 + $0x38] sm:$0xff] }
 0x1ae   :  { %1862 = vmatprep.subr.bf16.mxu1 %v3994_v13 }
 0x1af   :  { %3203 = vrot.lane.b32.xlu1 %v4024_v41, %s3618_s9 }
 0x1b0   :  { %3213 = vrot.lane.b32.xlu0 %v4026_v28, %s3618_s9 }
 0x1b1   :  { %1863 = vmatpush1.bf16.msra.mxu1 %v3974_v36  ;;  %v3530_v36 = vld [vmem:[%s5272_s3 + $0x98] ss:$24 sps:$4 sm:$0xff]  }
 0x1b2   :  { %1864 = vmatprep.subr.bf16.mxu1 %v4004_v24 }
 0x1b3   :  { %3208 = vrot.lane.b32.xlu1 %v4024_v41, %s3617_s0 }
 0x1b4   :  { %3218 = vrot.lane.b32.xlu0 %v4026_v28, %s3617_s0 }
 0x1b5   :  { %1865 = vmatpush1.bf16.msra.mxu1 %v3998_v39 }
 0x1b6   :  { %1866 = vmatprep.subr.bf16.mxu1 %v4028_v56 }
 0x1b7   :  { %3223 = vrot.lane.b32.xlu1 %v4048_v43, %s3618_s9 }
 0x1b8   :  { %3233 = vrot.lane.b32.xlu0 %v4050_v23, %s3618_s9 }
 0x1b9   :  { %1867 = vmatpush1.bf16.msra.mxu1 %v4022_v19 }
 0x1ba   :  { %1868 = vmatprep.subr.bf16.mxu1 %v4052_v61 }
 0x1bb   :  { %3228 = vrot.lane.b32.xlu1 %v4048_v43, %s3617_s0 }
 0x1bc   :  { %3238 = vrot.lane.b32.xlu0 %v4050_v23, %s3617_s0 }
 0x1bd   :  { %1869 = vmatpush1.bf16.msra.mxu1 %v4046_v18 }
 0x1be   :  { %1870 = vmatprep.subr.bf16.mxu1 %v1358_v35 }
 0x1bf   :  { %3243 = vrot.lane.b32.xlu1 %v3242_v16, %s3618_s9 }
 0x1c0   :  { %3258 = vrot.lane.b32.xlu0 %v3257_v45, %s3618_s9 }
 0x1c1   :  { %1871 = vmatpush1.bf16.msra.mxu1 %v1357_v17  ;;  %v3537_v17 = vld [vmem:[%s5272_s3 + $0x12c] ss:$24 sps:$4 sm:$0xff]  }
 0x1c3   :  { %3248 = vrot.lane.b32.xlu1 %v3242_v16, %s3617_s0  ;;  %v1395_v16 = vld [vmem:[%s5273_s4 + $0x20] sm:$0xff] }
 0x1c4   :  { %3263 = vrot.lane.b32.xlu0 %v3257_v45, %s3617_s0  ;;  %1873 = vmatmul.mubr.bf16.vlgmr.msra.gmra.mrb[32].mxu1 %v3519_v15  ;;  %v1396_v15 = vld [vmem:[%s5273_s4 + $0x28] sm:$0xff] }
 0x1c5   :  { %1882 = vmatprep.mubr.bf16.mxu1 %v3522_v58 }
 0x1c7   :  { %3253 = vrot.lane.b32.xlu1 %v4009_v14, %s3618_s9 }
 0x1c8   :  { %3268 = vrot.lane.b32.xlu0 %v4011_v52, %s3618_s9 }
 0x1cb   :  { %3273 = vrot.lane.b32.xlu1 %v4009_v14, %s3617_s0 }
 0x1cc   :  { %3278 = vrot.lane.b32.xlu0 %v4011_v52, %s3617_s0  ;;  %1883 = vmatmul.mubr.bf16.gmra.mrb[36].mxu1 %v3524_v4 }
 0x1cd   :  { %1892 = vmatprep.mubr.bf16.mxu1 %v3525_v47 }
 0x1cf   :  { %3283 = vrot.lane.b32.xlu1 %v4033_v21, %s3618_s9 }
 0x1d0   :  { %3288 = vrot.lane.b32.xlu0 %v4035_v51, %s3618_s9 }
 0x1d3   :  { %3293 = vrot.lane.b32.xlu1 %v4033_v21, %s3617_s0 }
 0x1d4   :  { %3298 = vrot.lane.b32.xlu0 %v4035_v51, %s3617_s0  ;;  %1893 = vmatmul.mubr.bf16.gmra.mrb[40].mxu1 %v3527_v34 }
 0x1d5   :  { %1902 = vmatprep.mubr.bf16.mxu1 %v3528_v22 }
 0x1d7   :  { %3303 = vrot.lane.b32.xlu1 %v4057_v27, %s3618_s9 }
 0x1d8   :  { %3308 = vrot.lane.b32.xlu0 %v4059_v53, %s3618_s9 }
 0x1d9   :  { %v3024_v33 = vpop.permute.xlu1 %3023 }
 0x1da   :  { %v3026_v49 = vunpack.i.h.bf16 %v3024_v33  ;;  %v3025_v8 = vunpack.i.l.bf16 %v3024_v33  ;;  %v3044_v13 = vpop.permute.xlu0 %3043 }
 0x1db   :  { %v3046_v39 = vunpack.i.h.bf16 %v3044_v13  ;;  %v3045_v25 = vunpack.i.l.bf16 %v3044_v13  ;;  %3313 = vrot.lane.b32.xlu1 %v4057_v27, %s3617_s0 }
 0x1dc   :  { %3318 = vrot.lane.b32.xlu0 %v4059_v53, %s3617_s0  ;;  %1903 = vmatmul.mubr.bf16.gmra.mrb[44].mxu1 %v3530_v36 }
 0x1dd   :  { %v911_v14 = vsel %vm100_vm3, %v3025_v8, %v3045_v25  ;;  %v912_v52 = vsel %vm100_vm3, %v3026_v49, %v3046_v39  ;;  %v943_v19 = vsel %vm100_vm3, %v3045_v25, %v3025_v8  ;;  %v944_v41 = vsel %vm100_vm3, %v3046_v39, %v3026_v49  ;;  %v3029_v28 = vpop.permute.xlu1 %3028  ;;  %1912 = vmatprep.mubr.bf16.mxu1 %v3531_v31  ;;  %v1397_v31 = vld [vmem:[%s5273_s4 + $0x30] sm:$0xff] }
 0x1de   :  { %v2617_v56 = vpack.c.bf16 %v944_v41, %v943_v19  ;;  %v3031_v21 = vunpack.i.h.bf16 %v3029_v28  ;;  %v3030_v51 = vunpack.i.l.bf16 %v3029_v28  ;;  %v3049_v18 = vpop.permute.xlu0 %3048  ;;  %v2614_v43 = vpack.c.bf16 %v912_v52, %v911_v14  ;;  %v3539_v41 = vld [vmem:[%s5272_s3 + $0x128] ss:$24 sps:$4 sm:$0xff]   ;;  %v3540_v28 = vld [vmem:[%s5272_s3 + $0x15c] ss:$24 sps:$4 sm:$0xff]  }
 0x1df   :  { %v3051_v23 = vunpack.i.h.bf16 %v3049_v18  ;;  %v3050_v61 = vunpack.i.l.bf16 %v3049_v18  ;;  %3323 = vrot.lane.b32.xlu1 %v4072_v37, %s3618_s9 }
 0x1e0   :  { %3333 = vrot.lane.b32.xlu0 %v4074_v29, %s3618_s9  ;;  %2615 = vmatprep.subr.msk.bf16.mxu0 %vm4178_vm10, %v2614_v43  ;;  %v1401_v43 = vld [vmem:[%s5273_s4 + $0x50] sm:$0xff] }
 0x1e1   :  { %v1167_v26 = vsel %vm113_vm0, %v3030_v51, %v3050_v61  ;;  %v1168_v48 = vsel %vm113_vm0, %v3031_v21, %v3051_v23  ;;  %v1199_v27 = vsel %vm113_vm0, %v3050_v61, %v3030_v51  ;;  %v1200_v53 = vsel %vm113_vm0, %v3051_v23, %v3031_v21  ;;  %v4218_v54 = vpop.permute.xlu1 %3033  ;;  %2618 = vmatpush1.bf16.msk.msra.mxu0 %vm4193_vm11, %v2617_v56  ;;  %v1399_v56 = vld [vmem:[%s5273_s4 + $0x40] sm:$0xff]  ;;  %v1400_v51 = vld [vmem:[%s5273_s4 + $0x48] sm:$0xff]  ;;  %v1402_v61 = vld [vmem:[%s5273_s4 + $0x58] sm:$0xff] }
 0x1e2   :  { %v2713_v55 = vpack.c.bf16 %v1168_v48, %v1167_v26  ;;  %v4229_v57 = vpop.permute.xlu0 %3053  ;;  %v2710_v32 = vpack.c.bf16 %v1200_v53, %v1199_v27  ;;  %v3542_v53 = vld [vmem:[%s5272_s3 + $0x158] ss:$24 sps:$4 sm:$0xff]  }
 0x1e3   :  { %3328 = vrot.lane.b32.xlu1 %v4072_v37, %s3617_s0 }
 0x1e4   :  { %3338 = vrot.lane.b32.xlu0 %v4074_v29, %s3617_s0  ;;  %2711 = vmatprep.subr.msk.bf16.mxu1 %vm4206_vm12, %v2710_v32 }
 0x1e5   :  { %v4246_v0 = vpop.permute.xlu1 %3038  ;;  %2714 = vmatpush1.bf16.msk.msra.mxu1 %vm4225_vm13, %v2713_v55 }
 0x1e6   :  { %v4253_v2 = vpop.permute.xlu0 %3058  ;;  %1913 = vmatmul.mubr.bf16.gmra.mrb[48].mxu1 %v3533_v60  ;;  %v3548_v60 = vld [vmem:[%s5272_s3 + $0x14] ss:$24 sps:$4 sm:$0xff]  }
 0x1e7   :  { %1409 = vperm.xlu1 %3020, %v1391_v63   ;;  %1922 = vmatprep.mubr.bf16.mxu1 %v3534_v62  ;;  %v1403_v62 = vld [vmem:[%s5273_s4 + $0x60] sm:$0xff] }
 0x1e8   :  { %1414 = vperm.xlu0 %3021, %v1392_v1  }
 0x1e9   :  { %v3064_v6 = vpop.permute.xlu1 %3063 }
 0x1ea   :  { %v3066_v44 = vunpack.i.h.bf16 %v3064_v6  ;;  %v3065_v7 = vunpack.i.l.bf16 %v3064_v6  ;;  %v3084_v40 = vpop.permute.xlu0 %3083 }
 0x1eb   :  { %v3086_v11 = vunpack.i.h.bf16 %v3084_v40  ;;  %v3085_v12 = vunpack.i.l.bf16 %v3084_v40  ;;  %1419 = vperm.xlu1 %3020, %v1393_v5  }
 0x1ec   :  { %1424 = vperm.xlu0 %3021, %v1394_v42  }
 0x1ed   :  { %v913_v20 = vsel %vm100_vm3, %v3065_v7, %v3085_v12  ;;  %v914_v35 = vsel %vm100_vm3, %v3066_v44, %v3086_v11  ;;  %v945_v45 = vsel %vm100_vm3, %v3085_v12, %v3065_v7  ;;  %v946_v37 = vsel %vm100_vm3, %v3086_v11, %v3066_v44  ;;  %v3069_v29 = vpop.permute.xlu1 %3068  ;;  %v1404_v44 = vld [vmem:[%s5273_s4 + $0x68] sm:$0xff] }
 0x1ee   :  { %v2623_v58 = vpack.c.bf16 %v946_v37, %v945_v45  ;;  %v3071_v4 = vunpack.i.h.bf16 %v3069_v29  ;;  %v3070_v47 = vunpack.i.l.bf16 %v3069_v29  ;;  %v3089_v34 = vpop.permute.xlu0 %3088  ;;  %v2620_v22 = vpack.c.bf16 %v914_v35, %v913_v20  ;;  %1923 = vmatmul.mubr.bf16.gmra.mrb[52].mxu1 %v3536_v10  ;;  %v1405_v20 = vld [vmem:[%s5273_s4 + $0x70] sm:$0xff] }
 0x1ef   :  { %v3091_v36 = vunpack.i.h.bf16 %v3089_v34  ;;  %v3090_v33 = vunpack.i.l.bf16 %v3089_v34  ;;  %1429 = vperm.xlu1 %3020, %v1395_v16   ;;  %1932 = vmatprep.mubr.bf16.mxu1 %v3537_v17 }
 0x1f0   :  { %1434 = vperm.xlu0 %3021, %v1396_v15   ;;  %2621 = vmatprep.subr.msk.bf16.mxu0 %vm4178_vm10, %v2620_v22 }
 0x1f1   :  { %v1169_v49 = vsel %vm113_vm0, %v3070_v47, %v3090_v33  ;;  %v1170_v8 = vsel %vm113_vm0, %v3071_v4, %v3091_v36  ;;  %v1201_v13 = vsel %vm113_vm0, %v3090_v33, %v3070_v47  ;;  %v1202_v39 = vsel %vm113_vm0, %v3091_v36, %v3071_v4  ;;  %v4294_v25 = vpop.permute.xlu1 %3073  ;;  %2624 = vmatpush1.bf16.msk.msra.mxu0 %vm4193_vm11, %v2623_v58  ;;  %v1406_v58 = vld [vmem:[%s5273_s4 + $0x78] sm:$0xff] }
 0x1f2   :  { %v2719_v14 = vpack.c.bf16 %v1170_v8, %v1169_v49  ;;  %v4301_v52 = vpop.permute.xlu0 %3093  ;;  %v2716_v19 = vpack.c.bf16 %v1202_v39, %v1201_v13 }
 0x1f3   :  { %1439 = vperm.xlu1 %3020, %v1397_v31  }
 0x1f4   :  { %1444 = vperm.xlu0 %3021, %v1398_v9   ;;  %2717 = vmatprep.subr.msk.bf16.mxu1 %vm4206_vm12, %v2716_v19 }
 0x1f5   :  { %v4314_v21 = vpop.permute.xlu1 %3078  ;;  %2720 = vmatpush1.bf16.msk.msra.mxu1 %vm4225_vm13, %v2719_v14 }
 0x1f6   :  { %v4321_v18 = vpop.permute.xlu0 %3098  ;;  %1933 = vmatmul.mubr.bf16.gmra.mrb[56].mxu1 %v3539_v41 }
 0x1f7   :  { %1449 = vperm.xlu1 %3020, %v1399_v56   ;;  %1942 = vmatprep.mubr.bf16.mxu1 %v3540_v28 }
 0x1f8   :  { %1454 = vperm.xlu0 %3021, %v1400_v51  }
 0x1f9   :  { %v3104_v23 = vpop.permute.xlu1 %3103 }
 0x1fa   :  { %v3106_v26 = vunpack.i.h.bf16 %v3104_v23  ;;  %v3105_v48 = vunpack.i.l.bf16 %v3104_v23  ;;  %v3124_v27 = vpop.permute.xlu0 %3123 }
 0x1fb   :  { %v3126_v55 = vunpack.i.h.bf16 %v3124_v27  ;;  %v3125_v32 = vunpack.i.l.bf16 %v3124_v27  ;;  %1459 = vperm.xlu1 %3020, %v1401_v43  }
 0x1fc   :  { %1464 = vperm.xlu0 %3021, %v1402_v61  }
 0x1fd   :  { %v915_v63 = vsel %vm100_vm3, %v3105_v48, %v3125_v32  ;;  %v916_v1 = vsel %vm100_vm3, %v3106_v26, %v3126_v55  ;;  %v947_v5 = vsel %vm100_vm3, %v3125_v32, %v3105_v48  ;;  %v948_v6 = vsel %vm100_vm3, %v3126_v55, %v3106_v26  ;;  %v3109_v42 = vpop.permute.xlu1 %3108 }
 0x1fe   :  { %v2626_v7 = vpack.c.bf16 %v916_v1, %v915_v63  ;;  %v2629_v40 = vpack.c.bf16 %v948_v6, %v947_v5  ;;  %v3111_v10 = vunpack.i.h.bf16 %v3109_v42  ;;  %v3110_v11 = vunpack.i.l.bf16 %v3109_v42  ;;  %v3129_v12 = vpop.permute.xlu0 %3128  ;;  %1943 = vmatmul.mubr.bf16.gmra.mrb[60].mxu1 %v3542_v53 }
 0x1ff   :  { %v3131_v17 = vunpack.i.h.bf16 %v3129_v12  ;;  %v3130_v16 = vunpack.i.l.bf16 %v3129_v12  ;;  %1469 = vperm.xlu1 %3020, %v1403_v62   ;;  %1985 = vmatprep.mubr.bf16.mxu1 %v3548_v60  ;;  %v3056_v12 = vunpack.i.h.bf16 %v4229_v57 }
 0x200   :  { %1474 = vperm.xlu0 %3021, %v1404_v44   ;;  %2627 = vmatprep.subr.msk.bf16.mxu0 %vm4178_vm10, %v2626_v7  ;;  %v3036_v44 = vunpack.i.h.bf16 %v4218_v54  ;;  %v3035_v7 = vunpack.i.l.bf16 %v4218_v54 }
 0x201   :  { %v1171_v35 = vsel %vm113_vm0, %v3110_v11, %v3130_v16  ;;  %v1172_v45 = vsel %vm113_vm0, %v3111_v10, %v3131_v17  ;;  %v1203_v37 = vsel %vm113_vm0, %v3130_v16, %v3110_v11  ;;  %v1204_v29 = vsel %vm113_vm0, %v3131_v17, %v3111_v10  ;;  %v4362_v15 = vpop.permute.xlu1 %3113  ;;  %2630 = vmatpush1.bf16.msk.msra.mxu0 %vm4193_vm11, %v2629_v40 }
 0x202   :  { %v2722_v4 = vpack.c.bf16 %v1204_v29, %v1203_v37  ;;  %v2725_v47 = vpack.c.bf16 %v1172_v45, %v1171_v35  ;;  %v4369_v34 = vpop.permute.xlu0 %3133  ;;  %v3055_v17 = vunpack.i.l.bf16 %v4229_v57 }
 0x203   :  { %1479 = vperm.xlu1 %3020, %v1405_v20  }
 0x204   :  { %1484 = vperm.xlu0 %3021, %v1406_v58   ;;  %2723 = vmatprep.subr.msk.bf16.mxu1 %vm4206_vm12, %v2722_v4 }
 0x205   :  { %v4373_v22 = vpop.permute.xlu1 %3118  ;;  %2726 = vmatpush1.bf16.msk.msra.mxu1 %vm4225_vm13, %v2725_v47 }
 0x206   :  { %v4377_v36 = vpop.permute.xlu0 %3138 }
 0x209   :  { %v3144_v33 = vpop.permute.xlu1 %3143 }
 0x20a   :  { %v3146_v31 = vunpack.i.h.bf16 %v3144_v33  ;;  %v3145_v49 = vunpack.i.l.bf16 %v3144_v33  ;;  %v3164_v8 = vpop.permute.xlu0 %3163 }
 0x20b   :  { %v3166_v13 = vunpack.i.h.bf16 %v3164_v8  ;;  %v3165_v39 = vunpack.i.l.bf16 %v3164_v8 }
 0x20d   :  { %v917_v9 = vsel %vm100_vm3, %v3145_v49, %v3165_v39  ;;  %v918_v14 = vsel %vm100_vm3, %v3146_v31, %v3166_v13  ;;  %v949_v19 = vsel %vm100_vm3, %v3165_v39, %v3145_v49  ;;  %v950_v41 = vsel %vm100_vm3, %v3166_v13, %v3146_v31  ;;  %v3149_v28 = vpop.permute.xlu1 %3148 }
 0x20e   :  { %v2632_v56 = vpack.c.bf16 %v918_v14, %v917_v9  ;;  %v2635_v51 = vpack.c.bf16 %v950_v41, %v949_v19  ;;  %v3151_v43 = vunpack.i.h.bf16 %v3149_v28  ;;  %v3150_v23 = vunpack.i.l.bf16 %v3149_v28  ;;  %v3169_v61 = vpop.permute.xlu0 %3168 }
 0x20f   :  { %v3171_v26 = vunpack.i.h.bf16 %v3169_v61  ;;  %v3170_v48 = vunpack.i.l.bf16 %v3169_v61  ;;  %v4425_v31 = vsel %vm100_vm3, %v3055_v17, %v3035_v7  ;;  %v4429_v49 = vsel %vm100_vm3, %v3056_v12, %v3036_v44 }
 0x210   :  { %2633 = vmatprep.subr.msk.bf16.mxu0 %vm4178_vm10, %v2632_v56  ;;  %v3041_v39 = vunpack.i.h.bf16 %v4246_v0  ;;  %v3040_v9 = vunpack.i.l.bf16 %v4246_v0  ;;  %v3061_v14 = vunpack.i.h.bf16 %v4253_v2  ;;  %v3060_v19 = vunpack.i.l.bf16 %v4253_v2 }
 0x211   :  { %v1173_v27 = vsel %vm113_vm0, %v3150_v23, %v3170_v48  ;;  %v1174_v53 = vsel %vm113_vm0, %v3151_v43, %v3171_v26  ;;  %v1205_v55 = vsel %vm113_vm0, %v3170_v48, %v3150_v23  ;;  %v1206_v32 = vsel %vm113_vm0, %v3171_v26, %v3151_v43  ;;  %v4397_v60 = vpop.permute.xlu1 %3153  ;;  %2636 = vmatpush1.bf16.msk.msra.mxu0 %vm4193_vm11, %v2635_v51 }
 0x212   :  { %v2728_v62 = vpack.c.bf16 %v1206_v32, %v1205_v55  ;;  %v2731_v63 = vpack.c.bf16 %v1174_v53, %v1173_v27  ;;  %v4401_v1 = vpop.permute.xlu0 %3173  ;;  %v4449_v48 = vsel %vm100_vm3, %v3035_v7, %v3055_v17  ;;  %v4453_v55 = vsel %vm100_vm3, %v3036_v44, %v3056_v12 }
 0x213   :  { %v2665_v32 = vpack.c.bf16 %v4429_v49, %v4425_v31 }
 0x214   :  { %2729 = vmatprep.subr.msk.bf16.mxu1 %vm4206_vm12, %v2728_v62  ;;  %v4459_v62 = vsel %vm113_vm0, %v3040_v9, %v3060_v19 }
 0x215   :  { %v4405_v5 = vpop.permute.xlu1 %3158  ;;  %2732 = vmatpush1.bf16.msk.msra.mxu1 %vm4225_vm13, %v2731_v63  ;;  %v4463_v63 = vsel %vm113_vm0, %v3041_v39, %v3061_v14 }
 0x216   :  { %v4409_v6 = vpop.permute.xlu0 %3178 }
 0x219   :  { %v3184_v42 = vpop.permute.xlu1 %3183 }
 0x21a   :  { %v3186_v40 = vunpack.i.h.bf16 %v3184_v42  ;;  %v3185_v10 = vunpack.i.l.bf16 %v3184_v42  ;;  %v3194_v11 = vpop.permute.xlu0 %3193 }
 0x21b   :  { %v3196_v16 = vunpack.i.h.bf16 %v3194_v11  ;;  %v3195_v20 = vunpack.i.l.bf16 %v3194_v11 }
 0x21d   :  { %v919_v35 = vsel %vm100_vm3, %v3185_v10, %v3195_v20  ;;  %v920_v45 = vsel %vm100_vm3, %v3186_v40, %v3196_v16  ;;  %v951_v37 = vsel %vm100_vm3, %v3195_v20, %v3185_v10  ;;  %v952_v54 = vsel %vm100_vm3, %v3196_v16, %v3186_v40  ;;  %v3189_v29 = vpop.permute.xlu1 %3188 }
 0x21e   :  { %v2638_v58 = vpack.c.bf16 %v920_v45, %v919_v35  ;;  %v2641_v4 = vpack.c.bf16 %v952_v54, %v951_v37  ;;  %v3191_v47 = vunpack.i.h.bf16 %v3189_v29  ;;  %v3190_v33 = vunpack.i.l.bf16 %v3189_v29  ;;  %v3199_v57 = vpop.permute.xlu0 %3198 }
 0x21f   :  { %v3201_v8 = vunpack.i.h.bf16 %v3199_v57  ;;  %v3200_v13 = vunpack.i.l.bf16 %v3199_v57  ;;  %v4479_v35 = vsel %vm113_vm0, %v3060_v19, %v3040_v9  ;;  %v2662_v54 = vpack.c.bf16 %v4453_v55, %v4449_v48 }
 0x220   :  { %2639 = vmatprep.subr.msk.bf16.mxu0 %vm4178_vm10, %v2638_v58  ;;  %v4485_v29 = vsel %vm113_vm0, %v3061_v14, %v3041_v39  ;;  %v2761_v58 = vpack.c.bf16 %v4463_v63, %v4459_v62 }
 0x221   :  { %v1175_v41 = vsel %vm113_vm0, %v3190_v33, %v3200_v13  ;;  %v1176_v28 = vsel %vm113_vm0, %v3191_v47, %v3201_v8  ;;  %v1207_v56 = vsel %vm113_vm0, %v3200_v13, %v3190_v33  ;;  %v1208_v51 = vsel %vm113_vm0, %v3201_v8, %v3191_v47  ;;  %v3204_v0 = vpop.permute.xlu1 %3203  ;;  %2642 = vmatpush1.bf16.msk.msra.mxu0 %vm4193_vm11, %v2641_v4 }
 0x222   :  { %v2734_v2 = vpack.c.bf16 %v1208_v51, %v1207_v56  ;;  %v2737_v43 = vpack.c.bf16 %v1176_v28, %v1175_v41  ;;  %v3206_v23 = vunpack.i.h.bf16 %v3204_v0  ;;  %v3205_v61 = vunpack.i.l.bf16 %v3204_v0  ;;  %v3214_v26 = vpop.permute.xlu0 %3213 }
 0x223   :  { %v3216_v27 = vunpack.i.h.bf16 %v3214_v26  ;;  %v3215_v53 = vunpack.i.l.bf16 %v3214_v26  ;;  %v3076_v4 = vunpack.i.h.bf16 %v4294_v25  ;;  %v3075_v47 = vunpack.i.l.bf16 %v4294_v25 }
 0x224   :  { %2735 = vmatprep.subr.msk.bf16.mxu1 %vm4206_vm12, %v2734_v2  ;;  %v3096_v28 = vunpack.i.h.bf16 %v4301_v52  ;;  %v3095_v56 = vunpack.i.l.bf16 %v4301_v52  ;;  %v3081_v2 = vunpack.i.h.bf16 %v4314_v21 }
 0x225   :  { %v921_v42 = vsel %vm100_vm3, %v3205_v61, %v3215_v53  ;;  %v922_v44 = vsel %vm100_vm3, %v3206_v23, %v3216_v27  ;;  %v953_v7 = vsel %vm100_vm3, %v3215_v53, %v3205_v61  ;;  %v954_v40 = vsel %vm100_vm3, %v3216_v27, %v3206_v23  ;;  %v3209_v10 = vpop.permute.xlu1 %3208  ;;  %2738 = vmatpush1.bf16.msk.msra.mxu1 %vm4225_vm13, %v2737_v43 }
 0x226   :  { %v2644_v11 = vpack.c.bf16 %v922_v44, %v921_v42  ;;  %v2647_v12 = vpack.c.bf16 %v954_v40, %v953_v7  ;;  %v3211_v17 = vunpack.i.h.bf16 %v3209_v10  ;;  %v3210_v16 = vunpack.i.l.bf16 %v3209_v10  ;;  %v3219_v20 = vpop.permute.xlu0 %3218 }
 0x227   :  { %v3221_v45 = vunpack.i.h.bf16 %v3219_v20  ;;  %v3220_v37 = vunpack.i.l.bf16 %v3219_v20  ;;  %v3080_v43 = vunpack.i.l.bf16 %v4314_v21  ;;  %v3101_v23 = vunpack.i.h.bf16 %v4321_v18 }
 0x228   :  { %2645 = vmatprep.subr.msk.bf16.mxu0 %vm4178_vm10, %v2644_v11  ;;  %v3100_v61 = vunpack.i.l.bf16 %v4321_v18 }
 0x229   :  { %v1177_v33 = vsel %vm113_vm0, %v3210_v16, %v3220_v37  ;;  %v1178_v57 = vsel %vm113_vm0, %v3211_v17, %v3221_v45  ;;  %v1209_v8 = vsel %vm113_vm0, %v3220_v37, %v3210_v16  ;;  %v1210_v13 = vsel %vm113_vm0, %v3221_v45, %v3211_v17  ;;  %v3224_v39 = vpop.permute.xlu1 %3223  ;;  %2648 = vmatpush1.bf16.msk.msra.mxu0 %vm4193_vm11, %v2647_v12 }
 0x22a   :  { %v2740_v25 = vpack.c.bf16 %v1210_v13, %v1209_v8  ;;  %v2743_v9 = vpack.c.bf16 %v1178_v57, %v1177_v33  ;;  %v3226_v14 = vunpack.i.h.bf16 %v3224_v39  ;;  %v3225_v19 = vunpack.i.l.bf16 %v3224_v39  ;;  %v3234_v41 = vpop.permute.xlu0 %3233 }
 0x22b   :  { %v3236_v51 = vunpack.i.h.bf16 %v3234_v41  ;;  %v3235_v0 = vunpack.i.l.bf16 %v3234_v41  ;;  %v4523_v12 = vsel %vm100_vm3, %v3075_v47, %v3095_v56  ;;  %v4527_v17 = vsel %vm100_vm3, %v3076_v4, %v3096_v28 }
 0x22c   :  { %2741 = vmatprep.subr.msk.bf16.mxu1 %vm4206_vm12, %v2740_v25  ;;  %v4531_v45 = vsel %vm100_vm3, %v3095_v56, %v3075_v47  ;;  %v4535_v37 = vsel %vm100_vm3, %v3096_v28, %v3076_v4  ;;  %v4543_v33 = vsel %vm113_vm0, %v3100_v61, %v3080_v43  ;;  %v4551_v47 = vsel %vm113_vm0, %v3101_v23, %v3081_v2 }
 0x22d   :  { %v923_v26 = vsel %vm100_vm3, %v3225_v19, %v3235_v0  ;;  %v924_v27 = vsel %vm100_vm3, %v3226_v14, %v3236_v51  ;;  %v955_v52 = vsel %vm100_vm3, %v3235_v0, %v3225_v19  ;;  %v956_v53 = vsel %vm100_vm3, %v3236_v51, %v3226_v14  ;;  %v3229_v42 = vpop.permute.xlu1 %3228  ;;  %2744 = vmatpush1.bf16.msk.msra.mxu1 %vm4225_vm13, %v2743_v9 }
 0x22e   :  { %v2650_v44 = vpack.c.bf16 %v924_v27, %v923_v26  ;;  %v2653_v7 = vpack.c.bf16 %v956_v53, %v955_v52  ;;  %v3231_v40 = vunpack.i.h.bf16 %v3229_v42  ;;  %v3230_v10 = vunpack.i.l.bf16 %v3229_v42  ;;  %v3239_v11 = vpop.permute.xlu0 %3238 }
 0x22f   :  { %v3241_v16 = vunpack.i.h.bf16 %v3239_v11  ;;  %v3240_v20 = vunpack.i.l.bf16 %v3239_v11  ;;  %v3116_v28 = vunpack.i.h.bf16 %v4362_v15  ;;  %v3115_v56 = vunpack.i.l.bf16 %v4362_v15 }
 0x230   :  { %2651 = vmatprep.subr.msk.bf16.mxu0 %vm4178_vm10, %v2650_v44  ;;  %v3136_v26 = vunpack.i.h.bf16 %v4369_v34  ;;  %v3135_v27 = vunpack.i.l.bf16 %v4369_v34  ;;  %v3121_v52 = vunpack.i.h.bf16 %v4373_v22  ;;  %v3120_v53 = vunpack.i.l.bf16 %v4373_v22 }
 0x231   :  { %v1179_v4 = vsel %vm113_vm0, %v3230_v10, %v3240_v20  ;;  %v1180_v57 = vsel %vm113_vm0, %v3231_v40, %v3241_v16  ;;  %v1211_v8 = vsel %vm113_vm0, %v3240_v20, %v3230_v10  ;;  %v1212_v13 = vsel %vm113_vm0, %v3241_v16, %v3231_v40  ;;  %v3244_v39 = vpop.permute.xlu1 %3243  ;;  %2654 = vmatpush1.bf16.msk.msra.mxu0 %vm4193_vm11, %v2653_v7 }
 0x232   :  { %v2746_v25 = vpack.c.bf16 %v1212_v13, %v1211_v8  ;;  %v2749_v9 = vpack.c.bf16 %v1180_v57, %v1179_v4  ;;  %v3246_v14 = vunpack.i.h.bf16 %v3244_v39  ;;  %v3245_v19 = vunpack.i.l.bf16 %v3244_v39  ;;  %v3259_v41 = vpop.permute.xlu0 %3258 }
 0x233   :  { %v3261_v51 = vunpack.i.h.bf16 %v3259_v41  ;;  %v3260_v0 = vunpack.i.l.bf16 %v3259_v41  ;;  %v3141_v4 = vunpack.i.h.bf16 %v4377_v36  ;;  %v3140_v57 = vunpack.i.l.bf16 %v4377_v36 }
 0x234   :  { %2747 = vmatprep.subr.msk.bf16.mxu1 %vm4206_vm12, %v2746_v25  ;;  %v3156_v39 = vunpack.i.h.bf16 %v4397_v60  ;;  %v3155_v25 = vunpack.i.l.bf16 %v4397_v60  ;;  %v1186_v48 = vsel %vm113_vm0, %v3081_v2, %v3101_v23  ;;  %v2764_v55 = vpack.c.bf16 %v4551_v47, %v4543_v33 }
 0x235   :  { %v925_v42 = vsel %vm100_vm3, %v3245_v19, %v3260_v0  ;;  %v926_v44 = vsel %vm100_vm3, %v3246_v14, %v3261_v51  ;;  %v957_v15 = vsel %vm100_vm3, %v3260_v0, %v3245_v19  ;;  %v958_v7 = vsel %vm100_vm3, %v3261_v51, %v3246_v14  ;;  %v3249_v34 = vpop.permute.xlu1 %3248  ;;  %2750 = vmatpush1.bf16.msk.msra.mxu1 %vm4225_vm13, %v2749_v9 }
 0x236   :  { %v2656_v40 = vpack.c.bf16 %v926_v44, %v925_v42  ;;  %v2659_v10 = vpack.c.bf16 %v958_v7, %v957_v15  ;;  %v3251_v11 = vunpack.i.h.bf16 %v3249_v34  ;;  %v3250_v16 = vunpack.i.l.bf16 %v3249_v34  ;;  %v3264_v20 = vpop.permute.xlu0 %3263 }
 0x237   :  { %v3266_v8 = vunpack.i.h.bf16 %v3264_v20  ;;  %v3265_v13 = vunpack.i.l.bf16 %v3264_v20  ;;  %v3176_v14 = vunpack.i.h.bf16 %v4401_v1  ;;  %v3175_v19 = vunpack.i.l.bf16 %v4401_v1 }
 0x238   :  { %2657 = vmatprep.subr.msk.bf16.mxu0 %vm4178_vm10, %v2656_v40  ;;  %v2671_v1 = vpack.c.bf16 %v4535_v37, %v4531_v45  ;;  %v2758_v15 = vpack.c.bf16 %v4485_v29, %v4479_v35  ;;  %v1185_v45 = vsel %vm113_vm0, %v3080_v43, %v3100_v61  ;;  %v2668_v35 = vpack.c.bf16 %v4527_v17, %v4523_v12 }
 0x239   :  { %v1181_v9 = vsel %vm113_vm0, %v3250_v16, %v3265_v13  ;;  %v1182_v41 = vsel %vm113_vm0, %v3251_v11, %v3266_v8  ;;  %v1213_v36 = vsel %vm113_vm0, %v3265_v13, %v3250_v16  ;;  %v1214_v51 = vsel %vm113_vm0, %v3266_v8, %v3251_v11  ;;  %v4599_v60 = vpop.permute.xlu1 %3253  ;;  %2660 = vmatpush1.bf16.msk.msra.mxu0 %vm4193_vm11, %v2659_v10 }
 0x23a   :  { %v2752_v0 = vpack.c.bf16 %v1214_v51, %v1213_v36  ;;  %v2755_v42 = vpack.c.bf16 %v1182_v41, %v1181_v9  ;;  %v4605_v44 = vpop.permute.xlu0 %3268  ;;  %2663 = vmatprep.subr.msk.bf16.mxu0 %vm4178_vm10, %v2662_v54  ;;  %v931_v54 = vsel %vm100_vm3, %v3115_v56, %v3135_v27  ;;  %v932_v29 = vsel %vm100_vm3, %v3116_v28, %v3136_v26 }
 0x23b   :  { %v963_v18 = vsel %vm100_vm3, %v3135_v27, %v3115_v56  ;;  %v964_v21 = vsel %vm100_vm3, %v3136_v26, %v3116_v28  ;;  %v1219_v2 = vsel %vm113_vm0, %v3140_v57, %v3120_v53  ;;  %v1220_v43 = vsel %vm113_vm0, %v3141_v4, %v3121_v52 }
 0x23c   :  { %2753 = vmatprep.subr.msk.bf16.mxu1 %vm4206_vm12, %v2752_v0  ;;  %v933_v23 = vsel %vm100_vm3, %v3155_v25, %v3175_v19  ;;  %v934_v61 = vsel %vm100_vm3, %v3156_v39, %v3176_v14  ;;  %v3161_v17 = vunpack.i.h.bf16 %v4405_v5  ;;  %v3160_v37 = vunpack.i.l.bf16 %v4405_v5 }
 0x23d   :  { %v4652_v12 = vpop.permute.xlu1 %3273  ;;  %2666 = vmatpush1.bf16.msk.msra.mxu0 %vm4193_vm11, %v2665_v32  ;;  %v3181_v33 = vunpack.i.h.bf16 %v4409_v6  ;;  %v3180_v47 = vunpack.i.l.bf16 %v4409_v6  ;;  %2756 = vmatpush1.bf16.msk.msra.mxu1 %vm4225_vm13, %v2755_v42  ;;  %v3256_v31 = vunpack.i.h.bf16 %v4599_v60  ;;  %v3255_v49 = vunpack.i.l.bf16 %v4599_v60 }
 0x23e   :  { %v4665_v28 = vpop.permute.xlu0 %3278  ;;  %2669 = vmatprep.subr.msk.bf16.mxu0 %vm4178_vm10, %v2668_v35  ;;  %v3271_v32 = vunpack.i.h.bf16 %v4605_v44  ;;  %v3270_v5 = vunpack.i.l.bf16 %v4605_v44  ;;  %2759 = vmatprep.subr.msk.bf16.mxu1 %vm4206_vm12, %v2758_v15  ;;  %v2767_v6 = vpack.c.bf16 %v1186_v48, %v1185_v45  ;;  %v2674_v56 = vpack.c.bf16 %v932_v29, %v931_v54 }
 0x23f   :  { %v2677_v26 = vpack.c.bf16 %v964_v21, %v963_v18  ;;  %v1187_v27 = vsel %vm113_vm0, %v3120_v53, %v3140_v57  ;;  %v1188_v7 = vsel %vm113_vm0, %v3121_v52, %v3141_v4  ;;  %v2770_v34 = vpack.c.bf16 %v1220_v43, %v1219_v2 }
 0x240   :  { %v965_v40 = vsel %vm100_vm3, %v3175_v19, %v3155_v25  ;;  %v966_v10 = vsel %vm100_vm3, %v3176_v14, %v3156_v39  ;;  %v2680_v16 = vpack.c.bf16 %v934_v61, %v933_v23  ;;  %v4691_v53 = vsel %vm113_vm0, %v3160_v37, %v3180_v47 }
 0x241   :  { %v3284_v11 = vpop.permute.xlu1 %3283  ;;  %2672 = vmatpush1.bf16.msk.msra.mxu0 %vm4193_vm11, %v2671_v1  ;;  %v4695_v22 = vsel %vm113_vm0, %v3161_v17, %v3181_v33  ;;  %2762 = vmatpush1.bf16.msk.msra.mxu1 %vm4225_vm13, %v2761_v58  ;;  %v1221_v20 = vsel %vm113_vm0, %v3180_v47, %v3160_v37  ;;  %v1222_v4 = vsel %vm113_vm0, %v3181_v33, %v3161_v17  ;;  %v3276_v62 = vunpack.i.h.bf16 %v4652_v12 }
 0x242   :  { %v3289_v52 = vpop.permute.xlu0 %3288  ;;  %2675 = vmatprep.subr.msk.bf16.mxu0 %vm4178_vm10, %v2674_v56  ;;  %v935_v57 = vsel %vm100_vm3, %v3255_v49, %v3270_v5  ;;  %v936_v8 = vsel %vm100_vm3, %v3256_v31, %v3271_v32  ;;  %2765 = vmatprep.subr.msk.bf16.mxu1 %vm4206_vm12, %v2764_v55  ;;  %v3275_v63 = vunpack.i.l.bf16 %v4652_v12  ;;  %v3281_v58 = vunpack.i.h.bf16 %v4665_v28 }
 0x243   :  { %v3280_v13 = vunpack.i.l.bf16 %v4665_v28  ;;  %v3286_v39 = vunpack.i.h.bf16 %v3284_v11  ;;  %v3285_v25 = vunpack.i.l.bf16 %v3284_v11  ;;  %v3291_v14 = vunpack.i.h.bf16 %v3289_v52 }
 0x244   :  { %v3290_v19 = vunpack.i.l.bf16 %v3289_v52  ;;  %v2773_v41 = vpack.c.bf16 %v1188_v7, %v1187_v27  ;;  %v2683_v51 = vpack.c.bf16 %v966_v10, %v965_v40  ;;  %v2776_v60 = vpack.c.bf16 %v1222_v4, %v1221_v20 }
 0x245   :  { %v3294_v9 = vpop.permute.xlu1 %3293  ;;  %2678 = vmatpush1.bf16.msk.msra.mxu0 %vm4193_vm11, %v2677_v26  ;;  %2768 = vmatpush1.bf16.msk.msra.mxu1 %vm4225_vm13, %v2767_v6  ;;  %v2779_v1 = vpack.c.bf16 %v4695_v22, %v4691_v53  ;;  %v967_v0 = vsel %vm100_vm3, %v3270_v5, %v3255_v49  ;;  %v968_v42 = vsel %vm100_vm3, %v3271_v32, %v3256_v31 }
 0x246   :  { %v3299_v36 = vpop.permute.xlu0 %3298  ;;  %2681 = vmatprep.subr.msk.bf16.mxu0 %vm4178_vm10, %v2680_v16  ;;  %2771 = vmatprep.subr.msk.bf16.mxu1 %vm4206_vm12, %v2770_v34  ;;  %v2686_v44 = vpack.c.bf16 %v936_v8, %v935_v57  ;;  %v1223_v15 = vsel %vm113_vm0, %v3280_v13, %v3275_v63  ;;  %v1224_v45 = vsel %vm113_vm0, %v3281_v58, %v3276_v62  ;;  %v3296_v35 = vunpack.i.h.bf16 %v3294_v9 }
 0x247   :  { %v937_v48 = vsel %vm100_vm3, %v3285_v25, %v3290_v19  ;;  %v938_v55 = vsel %vm100_vm3, %v3286_v39, %v3291_v14  ;;  %v3295_v54 = vunpack.i.l.bf16 %v3294_v9  ;;  %v3301_v18 = vunpack.i.h.bf16 %v3299_v36 }
 0x248   :  { %v3300_v21 = vunpack.i.l.bf16 %v3299_v36  ;;  %v2689_v61 = vpack.c.bf16 %v968_v42, %v967_v0  ;;  %v1191_v12 = vsel %vm113_vm0, %v3275_v63, %v3280_v13  ;;  %v1192_v33 = vsel %vm113_vm0, %v3276_v62, %v3281_v58 }
 0x249   :  { %v3304_v29 = vpop.permute.xlu1 %3303  ;;  %2684 = vmatpush1.bf16.msk.msra.mxu0 %vm4193_vm11, %v2683_v51  ;;  %2774 = vmatpush1.bf16.msk.msra.mxu1 %vm4225_vm13, %v2773_v41  ;;  %v969_v47 = vsel %vm100_vm3, %v3290_v19, %v3285_v25  ;;  %v970_v28 = vsel %vm100_vm3, %v3291_v14, %v3286_v39  ;;  %v2692_v31 = vpack.c.bf16 %v938_v55, %v937_v48 }
 0x24a   :  { %v3306_v2 = vunpack.i.h.bf16 %v3304_v29  ;;  %v3305_v43 = vunpack.i.l.bf16 %v3304_v29  ;;  %v3309_v23 = vpop.permute.xlu0 %3308  ;;  %2687 = vmatprep.subr.msk.bf16.mxu0 %vm4178_vm10, %v2686_v44  ;;  %2777 = vmatprep.subr.msk.bf16.mxu1 %vm4206_vm12, %v2776_v60  ;;  %v2782_v49 = vpack.c.bf16 %v1224_v45, %v1223_v15  ;;  %v1225_v56 = vsel %vm113_vm0, %v3300_v21, %v3295_v54 }
 0x24b   :  { %v3311_v17 = vunpack.i.h.bf16 %v3309_v23  ;;  %v3310_v37 = vunpack.i.l.bf16 %v3309_v23  ;;  %v1226_v26 = vsel %vm113_vm0, %v3301_v18, %v3296_v35  ;;  %v2785_v40 = vpack.c.bf16 %v1192_v33, %v1191_v12  ;;  %v3549_v12 = vld [vmem:[%s5272_s3 + $0x34] ss:$24 sps:$4 sm:$0xff]   ;;  %v3546_v33 = vld [vmem:[%s5272_s3 + $0x10] ss:$24 sps:$4 sm:$0xff]  }
 0x24c   :  { %v2695_v10 = vpack.c.bf16 %v970_v28, %v969_v47  ;;  %v1193_v53 = vsel %vm113_vm0, %v3295_v54, %v3300_v21  ;;  %v1194_v4 = vsel %vm113_vm0, %v3296_v35, %v3301_v18  ;;  %v2788_v57 = vpack.c.bf16 %v1226_v26, %v1225_v56  ;;  %v3543_v21 = vld [vmem:[%s5272_s3] ss:$24 sps:$4 sm:$0xff]   ;;  %v3552_v47 = vld [vmem:[%s5272_s3 + $0x44] ss:$24 sps:$4 sm:$0xff]   ;;  %v3551_v28 = vld [vmem:[%s5272_s3 + $0x30] ss:$24 sps:$4 sm:$0xff]  }
 0x24d   :  { %v939_v32 = vsel %vm100_vm3, %v3305_v43, %v3310_v37  ;;  %v940_v5 = vsel %vm100_vm3, %v3306_v2, %v3311_v17  ;;  %v3314_v6 = vpop.permute.xlu1 %3313  ;;  %2690 = vmatpush1.bf16.msk.msra.mxu0 %vm4193_vm11, %v2689_v61  ;;  %2780 = vmatpush1.bf16.msk.msra.mxu1 %vm4225_vm13, %v2779_v1  ;;  %v971_v22 = vsel %vm100_vm3, %v3310_v37, %v3305_v43  ;;  %v3560_v56 = vld [vmem:[%s5272_s3 + $0x70] ss:$24 sps:$4 sm:$0xff]   ;;  %v3564_v26 = vld [vmem:[%s5272_s3 + $0xa4] ss:$24 sps:$4 sm:$0xff]  }
 0x24e   :  { %v3316_v27 = vunpack.i.h.bf16 %v3314_v6  ;;  %v3315_v7 = vunpack.i.l.bf16 %v3314_v6  ;;  %v3319_v34 = vpop.permute.xlu0 %3318  ;;  %2693 = vmatprep.subr.msk.bf16.mxu0 %vm4178_vm10, %v2692_v31  ;;  %2783 = vmatprep.subr.msk.bf16.mxu1 %vm4206_vm12, %v2782_v49  ;;  %v972_v52 = vsel %vm100_vm3, %v3311_v17, %v3306_v2  ;;  %v2698_v20 = vpack.c.bf16 %v940_v5, %v939_v32  ;;  %v3555_v31 = vld [vmem:[%s5272_s3 + $0x64] ss:$24 sps:$4 sm:$0xff]   ;;  %v3554_v49 = vld [vmem:[%s5272_s3 + $0x40] ss:$24 sps:$4 sm:$0xff]   ;;  %v3558_v32 = vld [vmem:[%s5272_s3 + $0x74] ss:$24 sps:$4 sm:$0xff]  }
 0x24f   :  { %v3321_v11 = vunpack.i.h.bf16 %v3319_v34  ;;  %v3320_v16 = vunpack.i.l.bf16 %v3319_v34  ;;  %v2701_v25 = vpack.c.bf16 %v972_v52, %v971_v22  ;;  %v2791_v9 = vpack.c.bf16 %v1194_v4, %v1193_v53  ;;  %v3557_v5 = vld [vmem:[%s5272_s3 + $0x60] ss:$24 sps:$4 sm:$0xff]   ;;  %v3561_v6 = vld [vmem:[%s5272_s3 + $0x94] ss:$24 sps:$4 sm:$0xff]   ;;  %v3576_v53 = vld [vmem:[%s5272_s3 + $0x104] ss:$24 sps:$4 sm:$0xff]  }
 0x250   :  { %v3566_v34 = vld [vmem:[%s5272_s3 + $0xa0] ss:$24 sps:$4 sm:$0xff]   ;;  %v3575_v22 = vld [vmem:[%s5272_s3 + $0xf0] ss:$24 sps:$4 sm:$0xff]   ;;  %v3579_v52 = vld [vmem:[%s5272_s3 + $0x124] ss:$24 sps:$4 sm:$0xff]  }
 0x251   :  { %v1227_v8 = vsel %vm113_vm0, %v3320_v16, %v3315_v7  ;;  %v1228_v62 = vsel %vm113_vm0, %v3321_v11, %v3316_v27  ;;  %v3324_v63 = vpop.permute.xlu1 %3323  ;;  %2696 = vmatpush1.bf16.msk.msra.mxu0 %vm4193_vm11, %v2695_v10  ;;  %2786 = vmatpush1.bf16.msk.msra.mxu1 %vm4225_vm13, %v2785_v40  ;;  %v1195_v41 = vsel %vm113_vm0, %v3315_v7, %v3320_v16  ;;  %v3567_v7 = vld [vmem:[%s5272_s3 + $0xc4] ss:$24 sps:$4 sm:$0xff]   ;;  %v3570_v40 = vld [vmem:[%s5272_s3 + $0xd4] ss:$24 sps:$4 sm:$0xff]   ;;  %v3569_v10 = vld [vmem:[%s5272_s3 + $0xc0] ss:$24 sps:$4 sm:$0xff]  }
 0x252   :  { %v3326_v58 = vunpack.i.h.bf16 %v3324_v63  ;;  %v3325_v13 = vunpack.i.l.bf16 %v3324_v63  ;;  %v3334_v39 = vpop.permute.xlu0 %3333  ;;  %2699 = vmatprep.subr.msk.bf16.mxu0 %vm4178_vm10, %v2698_v20  ;;  %2789 = vmatprep.subr.msk.bf16.mxu1 %vm4206_vm12, %v2788_v57  ;;  %v1196_v36 = vsel %vm113_vm0, %v3316_v27, %v3321_v11  ;;  %v2794_v51 = vpack.c.bf16 %v1228_v62, %v1227_v8  ;;  %v3563_v27 = vld [vmem:[%s5272_s3 + $0x90] ss:$24 sps:$4 sm:$0xff]   ;;  %v3573_v11 = vld [vmem:[%s5272_s3 + $0xf4] ss:$24 sps:$4 sm:$0xff]   ;;  %v3578_v20 = vld [vmem:[%s5272_s3 + $0x100] ss:$24 sps:$4 sm:$0xff]  }
 0x253   :  { %v3336_v14 = vunpack.i.h.bf16 %v3334_v39  ;;  %v3335_v19 = vunpack.i.l.bf16 %v3334_v39  ;;  %v2797_v18 = vpack.c.bf16 %v1196_v36, %v1195_v41  ;;  %v3572_v16 = vld [vmem:[%s5272_s3 + $0xd0] ss:$24 sps:$4 sm:$0xff]   ;;  %v3582_v4 = vld [vmem:[%s5272_s3 + $0x134] ss:$24 sps:$4 sm:$0xff]   ;;  %v3581_v57 = vld [vmem:[%s5272_s3 + $0x120] ss:$24 sps:$4 sm:$0xff]  }
 0x254   :  { %v3585_v8 = vld [vmem:[%s5272_s3 + $0x154] ss:$24 sps:$4 sm:$0xff]   ;;  %v3584_v62 = vld [vmem:[%s5272_s3 + $0x130] ss:$24 sps:$4 sm:$0xff]   ;;  %v3588_v63 = vld [vmem:[%s5272_s3 + $0x164] ss:$24 sps:$4 sm:$0xff]  }
 0x255   :  { %v941_v60 = vsel %vm100_vm3, %v3325_v13, %v3335_v19  ;;  %v942_v1 = vsel %vm100_vm3, %v3326_v58, %v3336_v14  ;;  %v973_v0 = vsel %vm100_vm3, %v3335_v19, %v3325_v13  ;;  %v974_v42 = vsel %vm100_vm3, %v3336_v14, %v3326_v58  ;;  %v3329_v44 = vpop.permute.xlu1 %3328  ;;  %2702 = vmatpush1.bf16.msk.msra.mxu0 %vm4193_vm11, %v2701_v25  ;;  %v3587_v58 = vld [vmem:[%s5272_s3 + $0x150] ss:$24 sps:$4 sm:$0xff]   ;;  %v3590_v13 = vld [vmem:[%s5272_s3 + $0x160] ss:$24 sps:$4 sm:$0xff]  }
 0x256   :  { %v2704_v15 = vpack.c.bf16 %v942_v1, %v941_v60  ;;  %v2707_v45 = vpack.c.bf16 %v974_v42, %v973_v0  ;;  %v3331_v48 = vunpack.i.h.bf16 %v3329_v44  ;;  %v3330_v55 = vunpack.i.l.bf16 %v3329_v44  ;;  %2792 = vmatpush1.bf16.msk.msra.mxu1 %vm4225_vm13, %v2791_v9  ;;  %v3339_v35 = vpop.permute.xlu0 %3338 }
 0x257   :  { %v3341_v54 = vunpack.i.h.bf16 %v3339_v35  ;;  %v3340_v29 = vunpack.i.l.bf16 %v3339_v35  ;;  %2795 = vmatprep.subr.msk.bf16.mxu1 %vm4206_vm12, %v2794_v51 }
 0x258   :  { %2705 = vmatprep.subr.msk.bf16.mxu0 %vm4178_vm10, %v2704_v15 }
 0x259   :  { %v1197_v2 = vsel %vm113_vm0, %v3330_v55, %v3340_v29  ;;  %v1198_v43 = vsel %vm113_vm0, %v3331_v48, %v3341_v54  ;;  %v1229_v23 = vsel %vm113_vm0, %v3340_v29, %v3330_v55  ;;  %v1230_v61 = vsel %vm113_vm0, %v3341_v54, %v3331_v48  ;;  %2708 = vmatpush1.bf16.msk.msra.mxu0 %vm4193_vm11, %v2707_v45 }
 0x25a   :  { %v2800_v17 = vpack.c.bf16 %v1230_v61, %v1229_v23  ;;  %v2803_v37 = vpack.c.bf16 %v1198_v43, %v1197_v2  ;;  %2798 = vmatpush1.bf16.msk.msra.mxu1 %vm4225_vm13, %v2797_v18 }
 0x25c   :  { %1760 = vmatmul.mubr.bf16.vlgmr.msra.gmra.mrb[32].mxu0 %v3543_v21  ;;  %2801 = vmatprep.subr.msk.bf16.mxu1 %vm4206_vm12, %v2800_v17 }
 0x25d   :  { %1769 = vmatprep.mubr.bf16.mxu0 %v3549_v12 }
 0x25e   :  { %2804 = vmatpush1.bf16.msk.msra.mxu1 %vm4225_vm13, %v2803_v37 }
 0x261   :  { %1986 = vmatmul.mubr.bf16.vlgmr.msra.gmra.mrb[32].mxu1 %v3546_v33 }
 0x262   :  { %1995 = vmatprep.mubr.bf16.mxu1 %v3552_v47 }
 0x264   :  { %1770 = vmatmul.mubr.bf16.gmra.mrb[36].mxu0 %v3551_v28 }
 0x265   :  { %1779 = vmatprep.mubr.bf16.mxu0 %v3555_v31 }
 0x266   :  { %v1410_v19 = vpop.permute.xlu1 %1409 }
 0x267   :  { %v1415_v36 = vpop.permute.xlu0 %1414 }
 0x269   :  { %1996 = vmatmul.mubr.bf16.gmra.mrb[36].mxu1 %v3554_v49 }
 0x26a   :  { %2005 = vmatprep.mubr.bf16.mxu1 %v3558_v32  ;;  %v1420_v43 = vpop.permute.xlu1 %1419 }
 0x26b   :  { %v1425_v47 = vpop.permute.xlu0 %1424 }
 0x26c   :  { %1780 = vmatmul.mubr.bf16.gmra.mrb[40].mxu0 %v3557_v5 }
 0x26d   :  { %1789 = vmatprep.mubr.bf16.mxu0 %v3561_v6 }
 0x271   :  { %2006 = vmatmul.mubr.bf16.gmra.mrb[40].mxu1 %v3560_v56 }
 0x272   :  { %2015 = vmatprep.mubr.bf16.mxu1 %v3564_v26 }
 0x274   :  { %1790 = vmatmul.mubr.bf16.gmra.mrb[44].mxu0 %v3563_v27 }
 0x275   :  { %1799 = vmatprep.mubr.bf16.mxu0 %v3567_v7 }
 0x279   :  { %2016 = vmatmul.mubr.bf16.gmra.mrb[44].mxu1 %v3566_v34 }
 0x27a   :  { %2025 = vmatprep.mubr.bf16.mxu1 %v3570_v40 }
 0x27c   :  { %1800 = vmatmul.mubr.bf16.gmra.mrb[48].mxu0 %v3569_v10 }
 0x27d   :  { %1809 = vmatprep.mubr.bf16.mxu0 %v3573_v11 }
 0x281   :  { %2026 = vmatmul.mubr.bf16.gmra.mrb[48].mxu1 %v3572_v16 }
 0x282   :  { %2035 = vmatprep.mubr.bf16.mxu1 %v3576_v53 }
 0x284   :  { %1810 = vmatmul.mubr.bf16.gmra.mrb[52].mxu0 %v3575_v22 }
 0x285   :  { %1819 = vmatprep.mubr.bf16.mxu0 %v3579_v52 }
 0x289   :  { %2036 = vmatmul.mubr.bf16.gmra.mrb[52].mxu1 %v3578_v20  ;;  %v1430_v20 = vpop.permute.xlu1 %1429 }
 0x28a   :  { %2045 = vmatprep.mubr.bf16.mxu1 %v3582_v4 }
 0x28c   :  { %1820 = vmatmul.mubr.bf16.gmra.mrb[56].mxu0 %v3581_v57 }
 0x28d   :  { %1829 = vmatprep.mubr.bf16.mxu0 %v3585_v8 }
 0x291   :  { %2046 = vmatmul.mubr.bf16.gmra.mrb[56].mxu1 %v3584_v62 }
 0x292   :  { %2055 = vmatprep.mubr.bf16.mxu1 %v3588_v63 }
 0x294   :  { %1830 = vmatmul.mubr.bf16.gmra.mrb[60].mxu0 %v3587_v58 }
 0x299   :  { %2056 = vmatmul.mubr.bf16.gmra.mrb[60].mxu1 %v3590_v13  ;;  %v1435_v13 = vpop.permute.xlu0 %1434 }
 0x32f   :  { %v1761_v39 = vpop.f32.mrb[32].mxu0 }
 0x330   :  { %v1763_v25 = vpop.f32.mrb[33].mxu0  ;;  %v1762_v41 = vadd.f32 %v1761_v39, %v1410_v19 }
 0x331   :  { %v1765_v14 = vpop.f32.mrb[34].mxu0  ;;  %v1764_v51 = vadd.f32 %v1763_v25, %v1410_v19 }
 0x332   :  { %v1767_v9 = vpop.f32.mrb[35].mxu0  ;;  %v1766_v1 = vadd.f32 %v1765_v14, %v1415_v36 }
 0x333   :  { %v1768_v44 = vadd.f32 %v1767_v9, %v1415_v36 }
 0x334   :  { %v1987_v60 = vpop.f32.mrb[32].mxu1 }
 0x335   :  { %v2904_v0 = vadd.f32 %v1987_v60, %v1762_v41  ;;  %v1989_v42 = vpop.f32.mrb[33].mxu1 }
 0x336   :  { %v2906_v15 = vadd.f32 %v1989_v42, %v1764_v51  ;;  %v1991_v45 = vpop.f32.mrb[34].mxu1 }
 0x337   :  { %v2908_v48 = vadd.f32 %v1991_v45, %v1766_v1  ;;  %v1993_v55 = vpop.f32.mrb[35].mxu1  ;;  %v1771_v35 = vpop.f32.mrb[36].mxu0  ;;  %v2066_v18 = vmax.f32 %v2904_v0, 0.0 }
 0x338   :  { %v2910_v54 = vadd.f32 %v1993_v55, %v1768_v44  ;;  %v1773_v29 = vpop.f32.mrb[37].mxu0  ;;  %v2067_v23 = vmax.f32 %v2906_v15, 0.0  ;;  %v1772_v33 = vadd.f32 %v1771_v35, %v1420_v43 }
 0x339   :  { %v2068_v21 = vmax.f32 %v2908_v48, 0.0  ;;  %v1775_v2 = vpop.f32.mrb[38].mxu0  ;;  %v1774_v31 = vadd.f32 %v1773_v29, %v1420_v43 }
 0x33a   :  { %v2069_v61 = vmax.f32 %v2910_v54, 0.0  ;;  %v1777_v12 = vpop.f32.mrb[39].mxu0  ;;  %v1776_v5 = vadd.f32 %v1775_v2, %v1425_v47  ;;  %v1440_v54 = vpop.permute.xlu1 %1439 }
 0x33b   :  { %v4918_v17 = vpack.i.bf16 %v2068_v21, %v2066_v18  ;;  %v4920_v37 = vpack.c.bf16 %v2068_v21, %v2066_v18  ;;  %v1778_v26 = vadd.f32 %v1777_v12, %v1425_v47 }
 0x33c   :  { %v4922_v28 = vpack.i.bf16 %v2069_v61, %v2067_v23  ;;  %v1997_v49 = vpop.f32.mrb[36].mxu1  ;;  %v4924_v32 = vpack.c.bf16 %v2069_v61, %v2067_v23  ;;  %v1445_v61 = vpop.permute.xlu0 %1444 }
 0x33d   :  { %v2912_v6 = vadd.f32 %v1997_v49, %v1772_v33  ;;  %v1999_v56 = vpop.f32.mrb[37].mxu1  ;;  %3343 = vrot.lane.b32.xlu1 %v4918_v17, %s3618_s9 }
 0x33e   :  { %v2914_v27 = vadd.f32 %v1999_v56, %v1774_v31  ;;  %v2001_v7 = vpop.f32.mrb[38].mxu1  ;;  %3348 = vrot.lane.b32.xlu0 %v4922_v28, %s3618_s9 }
 0x33f   :  { %v2916_v34 = vadd.f32 %v2001_v7, %v1776_v5  ;;  %v2003_v40 = vpop.f32.mrb[39].mxu1  ;;  %v1781_v10 = vpop.f32.mrb[40].mxu0  ;;  %v2070_v53 = vmax.f32 %v2912_v6, 0.0 }
 0x340   :  { %v2918_v11 = vadd.f32 %v2003_v40, %v1778_v26  ;;  %v1783_v16 = vpop.f32.mrb[41].mxu0  ;;  %v2071_v4 = vmax.f32 %v2914_v27, 0.0  ;;  %v1782_v58 = vadd.f32 %v1781_v10, %v1430_v20 }
 0x341   :  { %v2072_v22 = vmax.f32 %v2916_v34, 0.0  ;;  %v1785_v52 = vpop.f32.mrb[42].mxu0  ;;  %v1784_v25 = vadd.f32 %v1783_v16, %v1430_v20 }
 0x342   :  { %v2073_v57 = vmax.f32 %v2918_v11, 0.0  ;;  %v1787_v8 = vpop.f32.mrb[43].mxu0  ;;  %v1786_v9 = vadd.f32 %v1785_v52, %v1435_v13  ;;  %v1450_v52 = vpop.permute.xlu1 %1449 }
 0x343   :  { %v4930_v62 = vpack.i.bf16 %v2072_v22, %v2070_v53  ;;  %v4932_v63 = vpack.c.bf16 %v2072_v22, %v2070_v53  ;;  %v1788_v51 = vadd.f32 %v1787_v8, %v1435_v13 }
 0x344   :  { %v4934_v39 = vpack.i.bf16 %v2073_v57, %v2071_v4  ;;  %v2007_v14 = vpop.f32.mrb[40].mxu1  ;;  %v4936_v19 = vpack.c.bf16 %v2073_v57, %v2071_v4 }
 0x345   :  { %v2920_v41 = vadd.f32 %v2007_v14, %v1782_v58  ;;  %v2009_v36 = vpop.f32.mrb[41].mxu1  ;;  %3353 = vrot.lane.b32.xlu1 %v4930_v62, %s3618_s9 }
 0x346   :  { %v2922_v60 = vadd.f32 %v2009_v36, %v1784_v25  ;;  %v2011_v1 = vpop.f32.mrb[42].mxu1  ;;  %3358 = vrot.lane.b32.xlu0 %v4934_v39, %s3618_s9  ;;  %v1455_v25 = vpop.permute.xlu0 %1454 }
 0x347   :  { %v2924_v0 = vadd.f32 %v2011_v1, %v1786_v9  ;;  %v2013_v42 = vpop.f32.mrb[43].mxu1  ;;  %v1791_v44 = vpop.f32.mrb[44].mxu0  ;;  %v2074_v48 = vmax.f32 %v2920_v41, 0.0 }
 0x348   :  { %v2926_v15 = vadd.f32 %v2013_v42, %v1788_v51  ;;  %v1793_v45 = vpop.f32.mrb[45].mxu0  ;;  %v2075_v29 = vmax.f32 %v2922_v60, 0.0  ;;  %v1792_v23 = vadd.f32 %v1791_v44, %v1440_v54 }
 0x349   :  { %v2076_v55 = vmax.f32 %v2924_v0, 0.0  ;;  %v1795_v35 = vpop.f32.mrb[46].mxu0  ;;  %v1794_v33 = vadd.f32 %v1793_v45, %v1440_v54 }
 0x34a   :  { %v2077_v18 = vmax.f32 %v2926_v15, 0.0  ;;  %v1797_v21 = vpop.f32.mrb[47].mxu0  ;;  %v1796_v49 = vadd.f32 %v1795_v35, %v1445_v61 }
 0x34b   :  { %v4942_v2 = vpack.i.bf16 %v2076_v55, %v2074_v48  ;;  %v4944_v43 = vpack.c.bf16 %v2076_v55, %v2074_v48  ;;  %v1798_v56 = vadd.f32 %v1797_v21, %v1445_v61  ;;  %v1460_v21 = vpop.permute.xlu1 %1459 }
 0x34c   :  { %v4946_v12 = vpack.i.bf16 %v2077_v18, %v2075_v29  ;;  %v2017_v47 = vpop.f32.mrb[44].mxu1  ;;  %v4948_v31 = vpack.c.bf16 %v2077_v18, %v2075_v29 }
 0x34d   :  { %v2928_v5 = vadd.f32 %v2017_v47, %v1792_v23  ;;  %v2019_v6 = vpop.f32.mrb[45].mxu1  ;;  %3363 = vrot.lane.b32.xlu1 %v4942_v2, %s3618_s9 }
 0x34e   :  { %v2930_v26 = vadd.f32 %v2019_v6, %v1794_v33  ;;  %v2021_v27 = vpop.f32.mrb[46].mxu1  ;;  %3368 = vrot.lane.b32.xlu0 %v4946_v12, %s3618_s9  ;;  %v1465_v6 = vpop.permute.xlu0 %1464 }
 0x34f   :  { %v2932_v7 = vadd.f32 %v2021_v27, %v1796_v49  ;;  %v2023_v34 = vpop.f32.mrb[47].mxu1  ;;  %v1801_v40 = vpop.f32.mrb[48].mxu0  ;;  %v2078_v16 = vmax.f32 %v2928_v5, 0.0 }
 0x350   :  { %v2934_v10 = vadd.f32 %v2023_v34, %v1798_v56  ;;  %v1803_v11 = vpop.f32.mrb[49].mxu0  ;;  %v2079_v20 = vmax.f32 %v2930_v26, 0.0  ;;  %v1802_v13 = vadd.f32 %v1801_v40, %v1450_v52 }
 0x351   :  { %v2080_v53 = vmax.f32 %v2932_v7, 0.0  ;;  %v1805_v22 = vpop.f32.mrb[50].mxu0  ;;  %v1804_v9 = vadd.f32 %v1803_v11, %v1450_v52 }
 0x352   :  { %v2081_v4 = vmax.f32 %v2934_v10, 0.0  ;;  %v1807_v57 = vpop.f32.mrb[51].mxu0  ;;  %v1806_v51 = vadd.f32 %v1805_v22, %v1455_v25 }
 0x353   :  { %v4954_v8 = vpack.i.bf16 %v2080_v53, %v2078_v16  ;;  %v4956_v58 = vpack.c.bf16 %v2080_v53, %v2078_v16  ;;  %v1808_v0 = vadd.f32 %v1807_v57, %v1455_v25 }
 0x354   :  { %v4958_v14 = vpack.i.bf16 %v2081_v4, %v2079_v20  ;;  %v2027_v41 = vpop.f32.mrb[48].mxu1  ;;  %v4960_v36 = vpack.c.bf16 %v2081_v4, %v2079_v20 }
 0x355   :  { %v2936_v60 = vadd.f32 %v2027_v41, %v1802_v13  ;;  %v2029_v1 = vpop.f32.mrb[49].mxu1  ;;  %3373 = vrot.lane.b32.xlu1 %v4954_v8, %s3618_s9  ;;  %v1470_v41 = vpop.permute.xlu1 %1469 }
 0x356   :  { %v2938_v42 = vadd.f32 %v2029_v1, %v1804_v9  ;;  %v2031_v44 = vpop.f32.mrb[50].mxu1  ;;  %3378 = vrot.lane.b32.xlu0 %v4958_v14, %s3618_s9 }
 0x357   :  { %v2940_v15 = vadd.f32 %v2031_v44, %v1806_v51  ;;  %v2033_v45 = vpop.f32.mrb[51].mxu1  ;;  %v1811_v48 = vpop.f32.mrb[52].mxu0  ;;  %v2082_v54 = vmax.f32 %v2936_v60, 0.0 }
 0x358   :  { %v2942_v55 = vadd.f32 %v2033_v45, %v1808_v0  ;;  %v1813_v35 = vpop.f32.mrb[53].mxu0  ;;  %v2083_v23 = vmax.f32 %v2938_v42, 0.0  ;;  %v1812_v5 = vadd.f32 %v1811_v48, %v1460_v21 }
 0x359   :  { %v2084_v29 = vmax.f32 %v2940_v15, 0.0  ;;  %v1815_v18 = vpop.f32.mrb[54].mxu0  ;;  %v1814_v26 = vadd.f32 %v1813_v35, %v1460_v21  ;;  %v1475_v15 = vpop.permute.xlu0 %1474 }
 0x35a   :  { %v2085_v61 = vmax.f32 %v2942_v55, 0.0  ;;  %v1817_v33 = vpop.f32.mrb[55].mxu0  ;;  %v1816_v34 = vadd.f32 %v1815_v18, %v1465_v6 }
 0x35b   :  { %v4966_v47 = vpack.i.bf16 %v2084_v29, %v2082_v54  ;;  %v4968_v49 = vpack.c.bf16 %v2084_v29, %v2082_v54  ;;  %v1818_v11 = vadd.f32 %v1817_v33, %v1465_v6 }
 0x35c   :  { %v4970_v56 = vpack.i.bf16 %v2085_v61, %v2083_v23  ;;  %v2037_v27 = vpop.f32.mrb[52].mxu1  ;;  %v4972_v7 = vpack.c.bf16 %v2085_v61, %v2083_v23 }
 0x35d   :  { %v2944_v40 = vadd.f32 %v2037_v27, %v1812_v5  ;;  %v2039_v10 = vpop.f32.mrb[53].mxu1  ;;  %3383 = vrot.lane.b32.xlu1 %v4966_v47, %s3618_s9 }
 0x35e   :  { %v2946_v16 = vadd.f32 %v2039_v10, %v1814_v26  ;;  %v2041_v53 = vpop.f32.mrb[54].mxu1  ;;  %3388 = vrot.lane.b32.xlu0 %v4970_v56, %s3618_s9 }
 0x35f   :  { %v2948_v22 = vadd.f32 %v2041_v53, %v1816_v34  ;;  %v2043_v52 = vpop.f32.mrb[55].mxu1  ;;  %v1821_v20 = vpop.f32.mrb[56].mxu0  ;;  %v2086_v13 = vmax.f32 %v2944_v40, 0.0 }
 0x360   :  { %v2950_v4 = vadd.f32 %v2043_v52, %v1818_v11  ;;  %v1823_v57 = vpop.f32.mrb[57].mxu0  ;;  %v2087_v51 = vmax.f32 %v2946_v16, 0.0  ;;  %v1822_v44 = vadd.f32 %v1821_v20, %v1470_v41  ;;  %v1480_v11 = vpop.permute.xlu1 %1479 }
 0x361   :  { %v2088_v25 = vmax.f32 %v2948_v22, 0.0  ;;  %v1825_v9 = vpop.f32.mrb[58].mxu0  ;;  %v1824_v48 = vadd.f32 %v1823_v57, %v1470_v41  ;;  %v1485_v57 = vpop.permute.xlu0 %1484 }
 0x362   :  { %v2089_v60 = vmax.f32 %v2950_v4, 0.0  ;;  %v1827_v1 = vpop.f32.mrb[59].mxu0  ;;  %v1826_v54 = vadd.f32 %v1825_v9, %v1475_v15 }
 0x363   :  { %v4978_v0 = vpack.i.bf16 %v2088_v25, %v2086_v13  ;;  %v4980_v42 = vpack.c.bf16 %v2088_v25, %v2086_v13  ;;  %v1828_v21 = vadd.f32 %v1827_v1, %v1475_v15 }
 0x364   :  { %v4982_v45 = vpack.i.bf16 %v2089_v60, %v2087_v51  ;;  %v2047_v55 = vpop.f32.mrb[56].mxu1  ;;  %v4984_v35 = vpack.c.bf16 %v2089_v60, %v2087_v51 }
 0x365   :  { %v2952_v29 = vadd.f32 %v2047_v55, %v1822_v44  ;;  %v2049_v18 = vpop.f32.mrb[57].mxu1  ;;  %3393 = vrot.lane.b32.xlu1 %v4978_v0, %s3618_s9 }
 0x366   :  { %v2954_v23 = vadd.f32 %v2049_v18, %v1824_v48  ;;  %v2051_v61 = vpop.f32.mrb[58].mxu1  ;;  %3398 = vrot.lane.b32.xlu0 %v4982_v45, %s3618_s9 }
 0x367   :  { %v2956_v33 = vadd.f32 %v2051_v61, %v1826_v54  ;;  %v2053_v5 = vpop.f32.mrb[59].mxu1  ;;  %v1831_v6 = vpop.f32.mrb[60].mxu0  ;;  %v2090_v34 = vmax.f32 %v2952_v29, 0.0 }
 0x368   :  { %v2958_v26 = vadd.f32 %v2053_v5, %v1828_v21  ;;  %v1833_v27 = vpop.f32.mrb[61].mxu0  ;;  %v2091_v16 = vmax.f32 %v2954_v23, 0.0  ;;  %v1832_v4 = vadd.f32 %v1831_v6, %v1480_v11 }
 0x369   :  { %v2092_v40 = vmax.f32 %v2956_v33, 0.0  ;;  %v1835_v10 = vpop.f32.mrb[62].mxu0  ;;  %v1834_v25 = vadd.f32 %v1833_v27, %v1480_v11 }
 0x36a   :  { %v2093_v53 = vmax.f32 %v2958_v26, 0.0  ;;  %v1837_v22 = vpop.f32.mrb[63].mxu0  ;;  %v1836_v51 = vadd.f32 %v1835_v10, %v1485_v57 }
 0x36b   :  { %v3482_v52 = vpack.i.bf16 %v2092_v40, %v2090_v34  ;;  %v4990_v20 = vpack.c.bf16 %v2092_v40, %v2090_v34  ;;  %v1838_v44 = vadd.f32 %v1837_v22, %v1485_v57 }
 0x36c   :  { %v3487_v13 = vpack.i.bf16 %v2093_v53, %v2091_v16  ;;  %v2057_v9 = vpop.f32.mrb[60].mxu1  ;;  %v4992_v41 = vpack.c.bf16 %v2093_v53, %v2091_v16 }
 0x36d   :  { %v2960_v60 = vadd.f32 %v2057_v9, %v1832_v4  ;;  %v2059_v1 = vpop.f32.mrb[61].mxu1  ;;  %3403 = vrot.lane.b32.xlu1 %v3482_v52, %s3618_s9 }
 0x36e   :  { %v2962_v15 = vadd.f32 %v2059_v1, %v1834_v25  ;;  %v2061_v48 = vpop.f32.mrb[62].mxu1  ;;  %3408 = vrot.lane.b32.xlu0 %v3487_v13, %s3618_s9 }
 0x36f   :  { %v2964_v55 = vadd.f32 %v2061_v48, %v1836_v51  ;;  %v2063_v54 = vpop.f32.mrb[63].mxu1  ;;  %v2094_v18 = vmax.f32 %v2960_v60, 0.0 }
 0x370   :  { %v2966_v29 = vadd.f32 %v2063_v54, %v1838_v44  ;;  %v2095_v23 = vmax.f32 %v2962_v15, 0.0 }
 0x371   :  { %v2096_v21 = vmax.f32 %v2964_v55, 0.0 }
 0x372   :  { %v2097_v61 = vmax.f32 %v2966_v29, 0.0 }
 0x373   :  { %v3492_v33 = vpack.i.bf16 %v2096_v21, %v2094_v18  ;;  %v4996_v5 = vpack.c.bf16 %v2096_v21, %v2094_v18 }
 0x374   :  { %v3497_v6 = vpack.i.bf16 %v2097_v61, %v2095_v23  ;;  %v4998_v26 = vpack.c.bf16 %v2097_v61, %v2095_v23 }
 0x375   :  { %3413 = vrot.lane.b32.xlu1 %v3492_v33, %s3618_s9 }
 0x376   :  { %3418 = vrot.lane.b32.xlu0 %v3497_v6, %s3618_s9 }
 0x379   :  { %3423 = vrot.lane.b32.xlu1 %v4918_v17, %s3617_s0  ;;  %v5029_v17 = vld [vmem:[%s5274_s5] sm:$0x3f]  ;;  %s3620_s5 = smov [#allocation2]  }
 0x37a   :  { %3428 = vrot.lane.b32.xlu0 %v4922_v28, %s3617_s0  ;;  %v5034_v28 = vrot.slane %v5029_v17, %v3774_v46 }
 0x37d   :  { %3433 = vrot.lane.b32.xlu1 %v4930_v62, %s3617_s0  ;;  %v2425_v62 = vcombine.high %v5034_v28, %v5034_v28 }
 0x37e   :  { %3438 = vrot.lane.b32.xlu0 %v4934_v39, %s3617_s0  ;;  %v2403_v39 = vld [vmem:[%s5275_s6] sm:$0xf]  ;;  %s2524_s6 = sshll.u32 %s3620_s5, 4  ;;  %s2525_s6 = int_to_ptr.vmem [resolvable:$true] %s2524_s6 }
 0x37f   :  { %2461 = vmatprep.mubr.bf16.mxu0 %v2425_v62  ;;  %p3597_p1 = scmp.lt.s32.totalorder %s2525_s6, %s2525_s6 }
 0x381   :  { %3443 = vrot.lane.b32.xlu1 %v4942_v2, %s3617_s0 }
 0x382   :  { %3448 = vrot.lane.b32.xlu0 %v4946_v12, %s3617_s0 }
 0x385   :  { %3453 = vrot.lane.b32.xlu1 %v4954_v8, %s3617_s0 }
 0x386   :  { %3458 = vrot.lane.b32.xlu0 %v4958_v14, %s3617_s0 }
 0x389   :  { %3463 = vrot.lane.b32.xlu1 %v4966_v47, %s3617_s0 }
 0x38a   :  { %3468 = vrot.lane.b32.xlu0 %v4970_v56, %s3617_s0 }
 0x38d   :  { %3473 = vrot.lane.b32.xlu1 %v4978_v0, %s3617_s0 }
 0x38e   :  { %3478 = vrot.lane.b32.xlu0 %v4982_v45, %s3617_s0 }
 0x391   :  { %3483 = vrot.lane.b32.xlu1 %v3482_v52, %s3617_s0 }
 0x392   :  { %3488 = vrot.lane.b32.xlu0 %v3487_v13, %s3617_s0 }
 0x395   :  { %3493 = vrot.lane.b32.xlu1 %v3492_v33, %s3617_s0 }
 0x396   :  { %3498 = vrot.lane.b32.xlu0 %v3497_v6, %s3617_s0  ;;  %s3592_s0 = scalar_lea.vmem %s2525_s6, 128 }
 0x397   :  { %p3593_p0 = scmp.ne.s32.totalorder %s2525_s6, %s3592_s0  ;;  %p3598_p2 = scmp.lt.s32.totalorder %s3592_s0, %s3592_s0 }
 0x399   :  { %2406 = vperm.xlu1 %3020, %v2403_v39   ;;  %p3599_p3 = por %p3598_p2, %p3597_p1 }
 0x39b   :  { %p3600_p4 = pnand %p3599_p3, %p3593_p0 }
 0x3af   :  { %v3344_v2 = vpop.permute.xlu1 %3343 }
 0x3b0   :  { %v3346_v12 = vunpack.i.h.bf16 %v3344_v2  ;;  %v3345_v8 = vunpack.i.l.bf16 %v3344_v2  ;;  %v3349_v14 = vpop.permute.xlu0 %3348 }
 0x3b1   :  { %v3351_v47 = vunpack.i.h.bf16 %v3349_v14  ;;  %v3350_v56 = vunpack.i.l.bf16 %v3349_v14 }
 0x3b3   :  { %v2163_v0 = vsel %vm100_vm3, %v3345_v8, %v3350_v56  ;;  %v2164_v45 = vsel %vm100_vm3, %v3346_v12, %v3351_v47  ;;  %v2179_v27 = vsel %vm100_vm3, %v3350_v56, %v3345_v8  ;;  %v2180_v34 = vsel %vm100_vm3, %v3351_v47, %v3346_v12 }
 0x3b4   :  { %v2806_v40 = vpack.c.bf16 %v2164_v45, %v2163_v0  ;;  %v2809_v10 = vpack.c.bf16 %v2180_v34, %v2179_v27 }
 0x3b6   :  { %2807 = vmatprep.subr.msk.bf16.mxu0 %vm4178_vm10, %v2806_v40 }
 0x3b7   :  { %v3354_v11 = vpop.permute.xlu1 %3353  ;;  %2810 = vmatpush1.bf16.msk.msra.mxu0 %vm4193_vm11, %v2809_v10 }
 0x3b8   :  { %v3356_v16 = vunpack.i.h.bf16 %v3354_v11  ;;  %v3355_v53 = vunpack.i.l.bf16 %v3354_v11  ;;  %v3359_v22 = vpop.permute.xlu0 %3358 }
 0x3b9   :  { %v3361_v52 = vunpack.i.h.bf16 %v3359_v22  ;;  %v3360_v4 = vunpack.i.l.bf16 %v3359_v22 }
 0x3bb   :  { %v2165_v57 = vsel %vm100_vm3, %v3355_v53, %v3360_v4  ;;  %v2166_v13 = vsel %vm100_vm3, %v3356_v16, %v3361_v52  ;;  %v2181_v25 = vsel %vm100_vm3, %v3360_v4, %v3355_v53  ;;  %v2182_v9 = vsel %vm100_vm3, %v3361_v52, %v3356_v16 }
 0x3bc   :  { %v2812_v51 = vpack.c.bf16 %v2166_v13, %v2165_v57  ;;  %v2815_v60 = vpack.c.bf16 %v2182_v9, %v2181_v25 }
 0x3be   :  { %2813 = vmatprep.subr.msk.bf16.mxu0 %vm4178_vm10, %v2812_v51 }
 0x3bf   :  { %v3364_v1 = vpop.permute.xlu1 %3363  ;;  %2816 = vmatpush1.bf16.msk.msra.mxu0 %vm4193_vm11, %v2815_v60 }
 0x3c0   :  { %v3366_v44 = vunpack.i.h.bf16 %v3364_v1  ;;  %v3365_v15 = vunpack.i.l.bf16 %v3364_v1  ;;  %v3369_v48 = vpop.permute.xlu0 %3368 }
 0x3c1   :  { %v3371_v55 = vunpack.i.h.bf16 %v3369_v48  ;;  %v3370_v54 = vunpack.i.l.bf16 %v3369_v48 }
 0x3c3   :  { %v2167_v29 = vsel %vm100_vm3, %v3365_v15, %v3370_v54  ;;  %v2168_v18 = vsel %vm100_vm3, %v3366_v44, %v3371_v55  ;;  %v2183_v21 = vsel %vm100_vm3, %v3370_v54, %v3365_v15  ;;  %v2184_v23 = vsel %vm100_vm3, %v3371_v55, %v3366_v44 }
 0x3c4   :  { %v2818_v61 = vpack.c.bf16 %v2168_v18, %v2167_v29  ;;  %v2821_v33 = vpack.c.bf16 %v2184_v23, %v2183_v21 }
 0x3c6   :  { %2819 = vmatprep.subr.msk.bf16.mxu0 %vm4178_vm10, %v2818_v61 }
 0x3c7   :  { %v3374_v6 = vpop.permute.xlu1 %3373  ;;  %2822 = vmatpush1.bf16.msk.msra.mxu0 %vm4193_vm11, %v2821_v33 }
 0x3c8   :  { %v3376_v62 = vunpack.i.h.bf16 %v3374_v6  ;;  %v3375_v39 = vunpack.i.l.bf16 %v3374_v6  ;;  %v3379_v2 = vpop.permute.xlu0 %3378 }
 0x3c9   :  { %v3381_v12 = vunpack.i.h.bf16 %v3379_v2  ;;  %v3380_v8 = vunpack.i.l.bf16 %v3379_v2 }
 0x3cb   :  { %v2169_v14 = vsel %vm100_vm3, %v3375_v39, %v3380_v8  ;;  %v2170_v47 = vsel %vm100_vm3, %v3376_v62, %v3381_v12  ;;  %v2185_v56 = vsel %vm100_vm3, %v3380_v8, %v3375_v39  ;;  %v2186_v0 = vsel %vm100_vm3, %v3381_v12, %v3376_v62 }
 0x3cc   :  { %v2824_v45 = vpack.c.bf16 %v2170_v47, %v2169_v14  ;;  %v2827_v27 = vpack.c.bf16 %v2186_v0, %v2185_v56 }
 0x3ce   :  { %2825 = vmatprep.subr.msk.bf16.mxu0 %vm4178_vm10, %v2824_v45 }
 0x3cf   :  { %v3384_v34 = vpop.permute.xlu1 %3383  ;;  %2828 = vmatpush1.bf16.msk.msra.mxu0 %vm4193_vm11, %v2827_v27 }
 0x3d0   :  { %v3386_v40 = vunpack.i.h.bf16 %v3384_v34  ;;  %v3385_v10 = vunpack.i.l.bf16 %v3384_v34  ;;  %v3389_v11 = vpop.permute.xlu0 %3388 }
 0x3d1   :  { %v3391_v16 = vunpack.i.h.bf16 %v3389_v11  ;;  %v3390_v53 = vunpack.i.l.bf16 %v3389_v11 }
 0x3d3   :  { %v2171_v22 = vsel %vm100_vm3, %v3385_v10, %v3390_v53  ;;  %v2172_v52 = vsel %vm100_vm3, %v3386_v40, %v3391_v16  ;;  %v2187_v4 = vsel %vm100_vm3, %v3390_v53, %v3385_v10  ;;  %v2188_v57 = vsel %vm100_vm3, %v3391_v16, %v3386_v40 }
 0x3d4   :  { %v2830_v13 = vpack.c.bf16 %v2172_v52, %v2171_v22  ;;  %v2833_v25 = vpack.c.bf16 %v2188_v57, %v2187_v4 }
 0x3d6   :  { %2831 = vmatprep.subr.msk.bf16.mxu0 %vm4178_vm10, %v2830_v13 }
 0x3d7   :  { %v3394_v9 = vpop.permute.xlu1 %3393  ;;  %2834 = vmatpush1.bf16.msk.msra.mxu0 %vm4193_vm11, %v2833_v25 }
 0x3d8   :  { %v3396_v51 = vunpack.i.h.bf16 %v3394_v9  ;;  %v3395_v60 = vunpack.i.l.bf16 %v3394_v9  ;;  %v3399_v1 = vpop.permute.xlu0 %3398 }
 0x3d9   :  { %v3401_v44 = vunpack.i.h.bf16 %v3399_v1  ;;  %v3400_v15 = vunpack.i.l.bf16 %v3399_v1 }
 0x3db   :  { %v2173_v48 = vsel %vm100_vm3, %v3395_v60, %v3400_v15  ;;  %v2174_v55 = vsel %vm100_vm3, %v3396_v51, %v3401_v44  ;;  %v2189_v54 = vsel %vm100_vm3, %v3400_v15, %v3395_v60  ;;  %v2190_v29 = vsel %vm100_vm3, %v3401_v44, %v3396_v51 }
 0x3dc   :  { %v2836_v18 = vpack.c.bf16 %v2174_v55, %v2173_v48  ;;  %v2839_v21 = vpack.c.bf16 %v2190_v29, %v2189_v54 }
 0x3de   :  { %2837 = vmatprep.subr.msk.bf16.mxu0 %vm4178_vm10, %v2836_v18 }
 0x3df   :  { %v3404_v23 = vpop.permute.xlu1 %3403  ;;  %2840 = vmatpush1.bf16.msk.msra.mxu0 %vm4193_vm11, %v2839_v21 }
 0x3e0   :  { %v3406_v61 = vunpack.i.h.bf16 %v3404_v23  ;;  %v3405_v33 = vunpack.i.l.bf16 %v3404_v23  ;;  %v3409_v6 = vpop.permute.xlu0 %3408 }
 0x3e1   :  { %v3411_v62 = vunpack.i.h.bf16 %v3409_v6  ;;  %v3410_v39 = vunpack.i.l.bf16 %v3409_v6 }
 0x3e3   :  { %v2175_v2 = vsel %vm100_vm3, %v3405_v33, %v3410_v39  ;;  %v2176_v12 = vsel %vm100_vm3, %v3406_v61, %v3411_v62  ;;  %v2191_v8 = vsel %vm100_vm3, %v3410_v39, %v3405_v33  ;;  %v2192_v14 = vsel %vm100_vm3, %v3411_v62, %v3406_v61 }
 0x3e4   :  { %v2842_v47 = vpack.c.bf16 %v2176_v12, %v2175_v2  ;;  %v2845_v56 = vpack.c.bf16 %v2192_v14, %v2191_v8 }
 0x3e6   :  { %2843 = vmatprep.subr.msk.bf16.mxu0 %vm4178_vm10, %v2842_v47 }
 0x3e7   :  { %v3414_v0 = vpop.permute.xlu1 %3413  ;;  %2846 = vmatpush1.bf16.msk.msra.mxu0 %vm4193_vm11, %v2845_v56 }
 0x3e8   :  { %v3416_v45 = vunpack.i.h.bf16 %v3414_v0  ;;  %v3415_v27 = vunpack.i.l.bf16 %v3414_v0  ;;  %v3419_v34 = vpop.permute.xlu0 %3418 }
 0x3e9   :  { %v3421_v40 = vunpack.i.h.bf16 %v3419_v34  ;;  %v3420_v10 = vunpack.i.l.bf16 %v3419_v34 }
 0x3eb   :  { %v2177_v11 = vsel %vm100_vm3, %v3415_v27, %v3420_v10  ;;  %v2178_v16 = vsel %vm100_vm3, %v3416_v45, %v3421_v40  ;;  %v2193_v53 = vsel %vm100_vm3, %v3420_v10, %v3415_v27  ;;  %v2194_v22 = vsel %vm100_vm3, %v3421_v40, %v3416_v45  ;;  %v3424_v57 = vpop.permute.xlu1 %3423 }
 0x3ec   :  { %v2848_v52 = vpack.c.bf16 %v2178_v16, %v2177_v11  ;;  %v2851_v4 = vpack.c.bf16 %v2194_v22, %v2193_v53  ;;  %v3429_v13 = vpop.permute.xlu0 %3428 }
 0x3ee   :  { %2849 = vmatprep.subr.msk.bf16.mxu0 %vm4178_vm10, %v2848_v52 }
 0x3ef   :  { %2852 = vmatpush1.bf16.msk.msra.mxu0 %vm4193_vm11, %v2851_v4  ;;  %v3434_v25 = vpop.permute.xlu1 %3433 }
 0x3f0   :  { %2445 = vmatprep.subr.bf16.mxu0 %v4924_v32  ;;  %v3439_v24 = vpop.permute.xlu0 %3438  ;;  %v3426_v32 = vunpack.i.h.bf16 %v3424_v57 }
 0x3f1   :  { %v3441_v51 = vunpack.i.h.bf16 %v3439_v24 }
 0x3f3   :  { %2446 = vmatpush1.bf16.msra.mxu0 %v4920_v37  ;;  %v3444_v59 = vpop.permute.xlu1 %3443 }
 0x3f4   :  { %2447 = vmatprep.subr.bf16.mxu0 %v4936_v19  ;;  %v3449_v37 = vpop.permute.xlu0 %3448  ;;  %v3431_v19 = vunpack.i.h.bf16 %v3429_v13  ;;  %v3446_v1 = vunpack.i.h.bf16 %v3444_v59  ;;  %v3445_v44 = vunpack.i.l.bf16 %v3444_v59 }
 0x3f5   :  { %v3451_v15 = vunpack.i.h.bf16 %v3449_v37  ;;  %v3450_v48 = vunpack.i.l.bf16 %v3449_v37 }
 0x3f7   :  { %2448 = vmatpush1.bf16.msra.mxu0 %v4932_v63  ;;  %v3425_v63 = vunpack.i.l.bf16 %v3424_v57  ;;  %v2311_v61 = vsel %vm113_vm0, %v3450_v48, %v3445_v44  ;;  %v2312_v33 = vsel %vm113_vm0, %v3451_v15, %v3446_v1  ;;  %v2295_v14 = vsel %vm113_vm0, %v3445_v44, %v3450_v48 }
 0x3f8   :  { %2449 = vmatprep.subr.bf16.mxu0 %v4948_v31  ;;  %v3430_v31 = vunpack.i.l.bf16 %v3429_v13  ;;  %v3459_v9 = vpop.permute.xlu0 %3458  ;;  %v2866_v47 = vpack.c.bf16 %v2312_v33, %v2311_v61 }
 0x3f9   :  { %v3461_v62 = vunpack.i.h.bf16 %v3459_v9  ;;  %v3460_v39 = vunpack.i.l.bf16 %v3459_v9 }
 0x3fb   :  { %2450 = vmatpush1.bf16.msra.mxu0 %v4944_v43  ;;  %v3454_v43 = vpop.permute.xlu1 %3453 }
 0x3fc   :  { %2451 = vmatprep.subr.bf16.mxu0 %v4960_v36  ;;  %v2308_v36 = vsel %vm113_vm0, %v3431_v19, %v3426_v32  ;;  %v3469_v54 = vpop.permute.xlu0 %3468  ;;  %v3455_v6 = vunpack.i.l.bf16 %v3454_v43 }
 0x3fd   :  { %v3471_v45 = vunpack.i.h.bf16 %v3469_v54  ;;  %v3470_v27 = vunpack.i.l.bf16 %v3469_v54 }
 0x3fe   :  { %v2297_v10 = vsel %vm113_vm0, %v3455_v6, %v3460_v39 }
 0x3ff   :  { %2452 = vmatpush1.bf16.msra.mxu0 %v4956_v58  ;;  %v2307_v58 = vsel %vm113_vm0, %v3430_v31, %v3425_v63  ;;  %v3464_v55 = vpop.permute.xlu1 %3463 }
 0x400   :  { %2453 = vmatprep.subr.bf16.mxu0 %v4972_v7  ;;  %v3436_v7 = vunpack.i.h.bf16 %v3434_v25  ;;  %v2854_v60 = vpack.c.bf16 %v2308_v36, %v2307_v58  ;;  %v3479_v12 = vpop.permute.xlu0 %3478  ;;  %v3466_v56 = vunpack.i.h.bf16 %v3464_v55  ;;  %v3465_v0 = vunpack.i.l.bf16 %v3464_v55 }
 0x402   :  { %v2294_v21 = vsel %vm113_vm0, %v3436_v7, %v3441_v51  ;;  %v2315_v53 = vsel %vm113_vm0, %v3470_v27, %v3465_v0  ;;  %v2316_v22 = vsel %vm113_vm0, %v3471_v45, %v3466_v56  ;;  %v2299_v37 = vsel %vm113_vm0, %v3465_v0, %v3470_v27 }
 0x403   :  { %2454 = vmatpush1.bf16.msra.mxu0 %v4968_v49  ;;  %v3435_v49 = vunpack.i.l.bf16 %v3434_v25  ;;  %v3474_v2 = vpop.permute.xlu1 %3473  ;;  %v3481_v25 = vunpack.i.h.bf16 %v3479_v12 }
 0x404   :  { %2455 = vmatprep.subr.bf16.mxu0 %v4984_v35  ;;  %v3440_v35 = vunpack.i.l.bf16 %v3439_v24  ;;  %v3489_v4 = vpop.permute.xlu0 %3488  ;;  %v3476_v57 = vunpack.i.h.bf16 %v3474_v2  ;;  %v3475_v13 = vunpack.i.l.bf16 %v3474_v2  ;;  %v3480_v24 = vunpack.i.l.bf16 %v3479_v12 }
 0x405   :  { %v3490_v9 = vunpack.i.l.bf16 %v3489_v4 }
 0x406   :  { %v2309_v29 = vsel %vm113_vm0, %v3440_v35, %v3435_v49  ;;  %v2293_v18 = vsel %vm113_vm0, %v3435_v49, %v3440_v35  ;;  %v2317_v58 = vsel %vm113_vm0, %v3480_v24, %v3475_v13  ;;  %v2318_v36 = vsel %vm113_vm0, %v3481_v25, %v3476_v57 }
 0x407   :  { %2456 = vmatpush1.bf16.msra.mxu0 %v4980_v42  ;;  %v2291_v42 = vsel %vm113_vm0, %v3425_v63, %v3430_v31  ;;  %v2863_v8 = vpack.c.bf16 %v2294_v21, %v2293_v18  ;;  %v3484_v52 = vpop.permute.xlu1 %3483  ;;  %v2878_v63 = vpack.c.bf16 %v2316_v22, %v2315_v53  ;;  %v2301_v35 = vsel %vm113_vm0, %v3475_v13, %v3480_v24 }
 0x408   :  { %2457 = vmatprep.subr.bf16.mxu0 %v4992_v41  ;;  %v2292_v41 = vsel %vm113_vm0, %v3426_v32, %v3431_v19  ;;  %v2300_v32 = vsel %vm113_vm0, %v3466_v56, %v3471_v45  ;;  %v3486_v19 = vunpack.i.h.bf16 %v3484_v52  ;;  %v3485_v31 = vunpack.i.l.bf16 %v3484_v52  ;;  %v3499_v49 = vpop.permute.xlu0 %3498 }
 0x409   :  { %v3501_v48 = vunpack.i.h.bf16 %v3499_v49  ;;  %v3500_v55 = vunpack.i.l.bf16 %v3499_v49 }
 0x40b   :  { %2458 = vmatpush1.bf16.msra.mxu0 %v4990_v20  ;;  %v2310_v20 = vsel %vm113_vm0, %v3441_v51, %v3436_v7  ;;  %v3494_v7 = vpop.permute.xlu1 %3493  ;;  %v2881_v51 = vpack.c.bf16 %v2300_v32, %v2299_v37 }
 0x40c   :  { %2459 = vmatprep.subr.bf16.mxu0 %v4998_v26  ;;  %v2857_v26 = vpack.c.bf16 %v2292_v41, %v2291_v42  ;;  %v2860_v23 = vpack.c.bf16 %v2310_v20, %v2309_v29  ;;  %v2302_v42 = vsel %vm113_vm0, %v3476_v57, %v3481_v25  ;;  %v2884_v41 = vpack.c.bf16 %v2318_v36, %v2317_v58 }
 0x40d   :  { %v3496_v44 = vunpack.i.h.bf16 %v3494_v7  ;;  %v2887_v54 = vpack.c.bf16 %v2302_v42, %v2301_v35  ;;  %v2303_v29 = vsel %vm113_vm0, %v3485_v31, %v3490_v9 }
 0x40f   :  { %2460 = vmatpush1.bf16.msra.mxu0 %v4996_v5  ;;  %v3456_v5 = vunpack.i.h.bf16 %v3454_v43  ;;  %v3491_v43 = vunpack.i.h.bf16 %v3489_v4  ;;  %v2322_v21 = vsel %vm113_vm0, %v3501_v48, %v3496_v44  ;;  %v2306_v33 = vsel %vm113_vm0, %v3496_v44, %v3501_v48 }
 0x410   :  { %2855 = vmatprep.subr.msk.bf16.mxu0 %vm4206_vm12, %v2854_v60  ;;  %v2319_v60 = vsel %vm113_vm0, %v3490_v9, %v3485_v31 }
 0x411   :  { %v2314_v34 = vsel %vm113_vm0, %v3461_v62, %v3456_v5  ;;  %v2298_v11 = vsel %vm113_vm0, %v3456_v5, %v3461_v62  ;;  %v2304_v20 = vsel %vm113_vm0, %v3486_v19, %v3491_v43 }
 0x412   :  { %2462 = vmatmul.mubr.bf16.vlgmr.msra.gmra.mrb[64].mxu0 %v5034_v28  ;;  %v2296_v28 = vsel %vm113_vm0, %v3446_v1, %v3451_v15  ;;  %v2875_v59 = vpack.c.bf16 %v2298_v11, %v2297_v10  ;;  %v2320_v1 = vsel %vm113_vm0, %v3491_v43, %v3486_v19  ;;  %v3495_v15 = vunpack.i.l.bf16 %v3494_v7 }
 0x413   :  { %2858 = vmatpush1.bf16.msk.msra.mxu0 %vm4225_vm13, %v2857_v26  ;;  %2502 = vmatprep.mubr.bf16.mxu0 %v3616_v3  ;;  %v2313_v3 = vsel %vm113_vm0, %v3460_v39, %v3455_v6  ;;  %v2869_v40 = vpack.c.bf16 %v2296_v28, %v2295_v14  ;;  %v2890_v26 = vpack.c.bf16 %v2320_v1, %v2319_v60 }
 0x414   :  { %2861 = vmatprep.subr.msk.bf16.mxu0 %vm4206_vm12, %v2860_v23  ;;  %v2872_v16 = vpack.c.bf16 %v2314_v34, %v2313_v3  ;;  %v2321_v18 = vsel %vm113_vm0, %v3500_v55, %v3495_v15  ;;  %v2893_v23 = vpack.c.bf16 %v2304_v20, %v2303_v29  ;;  %v2305_v61 = vsel %vm113_vm0, %v3495_v15, %v3500_v55 }
 0x415   :  { %v2896_v5 = vpack.c.bf16 %v2322_v21, %v2321_v18  ;;  %v2410_v6 = vcombine.high %v5029_v17, %v5029_v17  ;;  %v2899_v62 = vpack.c.bf16 %v2306_v33, %v2305_v61 }
 0x417   :  { %2864 = vmatpush1.bf16.msk.msra.mxu0 %vm4225_vm13, %v2863_v8  ;;  %v2424_v39 = vrot.slane %v2410_v6, %v3774_v46 }
 0x418   :  { %2867 = vmatprep.subr.msk.bf16.mxu0 %vm4206_vm12, %v2866_v47  ;;  %v2407_v2 = vpop.permute.xlu1 %2406 }
 0x41b   :  { %2870 = vmatpush1.bf16.msk.msra.mxu0 %vm4225_vm13, %v2869_v40 }
 0x41c   :  { %2873 = vmatprep.subr.msk.bf16.mxu0 %vm4206_vm12, %v2872_v16 }
 0x41f   :  { %2876 = vmatpush1.bf16.msk.msra.mxu0 %vm4225_vm13, %v2875_v59 }
 0x420   :  { %2879 = vmatprep.subr.msk.bf16.mxu0 %vm4206_vm12, %v2878_v63 }
 0x423   :  { %2882 = vmatpush1.bf16.msk.msra.mxu0 %vm4225_vm13, %v2881_v51 }
 0x424   :  { %2885 = vmatprep.subr.msk.bf16.mxu0 %vm4206_vm12, %v2884_v41 }
 0x427   :  { %2888 = vmatpush1.bf16.msk.msra.mxu0 %vm4225_vm13, %v2887_v54 }
 0x428   :  { %2891 = vmatprep.subr.msk.bf16.mxu0 %vm4206_vm12, %v2890_v26 }
 0x42b   :  { %2894 = vmatpush1.bf16.msk.msra.mxu0 %vm4225_vm13, %v2893_v23 }
 0x42c   :  { %2897 = vmatprep.subr.msk.bf16.mxu0 %vm4206_vm12, %v2896_v5 }
 0x42f   :  { %2900 = vmatpush1.bf16.msk.msra.mxu0 %vm4225_vm13, %v2899_v62 }
 0x432   :  { %2503 = vmatmul.mubr.bf16.vlgmr.msra.gmra.mrb[64].mxu0 %v2424_v39 }
 0x505   :  { %v2504_v38 = vpop.f32.mrb[64].mxu0 }
 0x506   :  { %v2967_v12 = vadd.f32 %v2504_v38, %v2407_v2  ;;  %v2506_v8 = vpop.f32.mrb[65].mxu0 }
 0x507   :  { %v2968_v14 = vadd.f32 %v2506_v8, %v2407_v2  ;;  %v2508_v28 = vpop.f32.mrb[66].mxu0 }
 0x508   :  { %v2511_v17 = vmax.f32 %v2967_v12, 0.0  ;;  %v2509_v47 = vpop.f32.mrb[67].mxu0 }
 0x509   :  { %v2512_v56 = vmax.f32 %v2968_v14, 0.0 }
 0x50b   :  { %v2515_v30 = vcombine.low %v2511_v17, %v2512_v56 }
 0x50d   :  { %2517 = vst [vmem:[#allocation2] sm:$0xff] %v2515_v30 }
 0x50e   :  { %3603 = shalt.err (!%p3600_p4)
}
 0x50f   :  { %s3604_s18 = scalar_lea.hbm %s5276_s7, 128 }
 0x510   :  { %p3605_p5 = scmp.ne.s32.totalorder %s5276_s7, %s3604_s18  ;;  %p3608_p6 = scmp.lt.u32.totalorder %s3604_s18, %s5276_s7 }
 0x512   :  { %p3610_p7 = pnand %p3608_p6, %p3605_p5 }
 0x514   :  { %3613 = shalt.err (!%p3610_p7)
}
 0x515   :  { %2527 = dma.vmem_to_hbm [thread:$0]  %s2525_s6, 128, %s5276_s7, [#allocation3]  }
 0x516   :  { %3614 = dma.done.wait [#allocation3], 128  }
 0x517   :  { %3615 = vsyncadd [#allocation3], 4294967168 }
 0x518   :  { %2531 = vsyncpa [#allocation3], 1 }

</bundles_post_ra>
